<compile_context>
chip_gen: v6e
topology: v6e:2x2x1
jax: 0.10.0
libtpu: 0.0.40
codegen_flags: <defaults>
</compile_context>

<pallas_src>
import functools

import jax
import jax.numpy as jnp
from jax.experimental import pallas as pl
from jax.experimental.pallas import tpu as pltpu


def _layer_norm(x, gamma, beta, eps=1e-6):
    # Matches nn.LayerNorm(d_model, eps=1e-06) in the PyTorch module.
    mu = jnp.mean(x, axis=-1, keepdims=True)
    var = jnp.mean((x - mu) ** 2, axis=-1, keepdims=True)
    return (x - mu) * jax.lax.rsqrt(var + eps) * gamma + beta


# ----------------------------- fused encoder kernel -----------------------------
def encoder_kernel(x_ref, wqkv_ref, wo_ref, ln1_g_ref, ln1_b_ref,
                   w1_ref, b1_ref, w2_ref, b2_ref, ln2_g_ref, ln2_b_ref,
                   o_ref, *, n_layers, n_head, d_k, d_v):
    x = x_ref[0]                                   # (L, D), one batch element
    hdk = n_head * d_k
    hdv = n_head * d_v

    # Shared attention weights: read once, reused across all layers.
    wqkv = wqkv_ref[...]                           # (D, 2*hdk + hdv); Q cols pre-scaled
    ln1_g = ln1_g_ref[...]
    ln1_b = ln1_b_ref[...]

    for layer in range(n_layers):                  # static unroll over layers
        # ---- multi-head self-attention (weights shared across layers) ----
        residual = x
        qkv = jnp.dot(x, wqkv, preferred_element_type=jnp.float32)   # (L, 2*hdk+hdv)
        q = qkv[:, :hdk]                           # already scaled by 1/sqrt(d_k)
        k = qkv[:, hdk:2 * hdk]
        v = qkv[:, 2 * hdk:]

        attn_out = None
        for h in range(n_head):                    # static unroll over heads
            qh = q[:, h * d_k:(h + 1) * d_k]       # (L, dk)
            kh = k[:, h * d_k:(h + 1) * d_k]       # (L, dk)
            vh = v[:, h * d_v:(h + 1) * d_v]       # (L, dv)
            # q @ k^T without an explicit transpose: contract last dims.
            s = jax.lax.dot_general(qh, kh, (((1,), (1,)), ((), ())),
                                    preferred_element_type=jnp.float32)   # (L, L)
            s = s - jnp.max(s, axis=-1, keepdims=True)
            p = jnp.exp(s)
            p = p * pl.reciprocal(jnp.sum(p, axis=-1, keepdims=True), approx=True)
            oh = jnp.dot(p, vh, preferred_element_type=jnp.float32)       # (L, dv)
            # Accumulate fc(concat(heads)) as sum_h oh @ Wo[h*dv:(h+1)*dv, :]
            contrib = jnp.dot(oh, wo_ref[h * d_v:(h + 1) * d_v, :],
                              preferred_element_type=jnp.float32)         # (L, D)
            attn_out = contrib if attn_out is None else attn_out + contrib

        x = _layer_norm(attn_out + residual, ln1_g, ln1_b)                # post-LN

        # ---- position-wise FFN (per-layer weights, statically indexed) ----
        residual = x
        h1 = jnp.dot(x, w1_ref[layer], preferred_element_type=jnp.float32) + b1_ref[layer]
        h1 = jnp.maximum(h1, 0.0)                                          # ReLU
        y = jnp.dot(h1, w2_ref[layer], preferred_element_type=jnp.float32) + b2_ref[layer]
        x = _layer_norm(y + residual, ln2_g_ref[layer], ln2_b_ref[layer])  # post-LN

    o_ref[0] = x


def encoder_forward(x, params, *, n_layers, n_head, d_k, d_v):
    B, L, D = x.shape
    scale = 1.0 / (d_k ** 0.5)

    # Pack Q/K/V projections into a single operand (one matmul per layer inside
    # the kernel) and fold the attention scale into the Q columns once.
    wqkv = jnp.concatenate(
        [params["wq"] * scale, params["wk"], params["wv"]], axis=1)

    operands = (x, wqkv, params["wo"], params["ln1_g"], params["ln1_b"],
                params["w1"], params["b1"], params["w2"], params["b2"],
                params["ln2_g"], params["ln2_b"])

    def rep(arr):
        # Full-array block, constant index -> stays resident in VMEM across grid steps.
        n = arr.ndim
        return pl.BlockSpec(arr.shape, lambda b, _n=n: (0,) * _n)

    kernel = functools.partial(encoder_kernel, n_layers=n_layers,
                               n_head=n_head, d_k=d_k, d_v=d_v)

    in_specs = [pl.BlockSpec((1, L, D), lambda b: (b, 0, 0))] + \
               [rep(a) for a in operands[1:]]

    return pl.pallas_call(
        kernel,
        out_shape=jax.ShapeDtypeStruct((B, L, D), jnp.float32),
        grid=(B,),
        in_specs=in_specs,
        out_specs=pl.BlockSpec((1, L, D), lambda b: (b, 0, 0)),
        compiler_params=pltpu.CompilerParams(
            dimension_semantics=("parallel",)),   # both TCs on v7x; no-op on v5e/v6e
    )(*operands)


# ----------------------------- pure-JAX reference -----------------------------
def encoder_ref(x, params, *, n_layers, n_head, d_k, d_v):
    B, L, D = x.shape
    for i in range(n_layers):
        residual = x
        q = (x @ params["wq"]).reshape(B, L, n_head, d_k).transpose(0, 2, 1, 3)
        k = (x @ params["wk"]).reshape(B, L, n_head, d_k).transpose(0, 2, 1, 3)
        v = (x @ params["wv"]).reshape(B, L, n_head, d_v).transpose(0, 2, 1, 3)
        s = jnp.einsum("bhqd,bhkd->bhqk", q / (d_k ** 0.5), k)
        p = jax.nn.softmax(s, axis=-1)
        o = jnp.einsum("bhqk,bhkd->bhqd", p, v).transpose(0, 2, 1, 3).reshape(B, L, -1)
        x = _layer_norm(o @ params["wo"] + residual, params["ln1_g"], params["ln1_b"])
        residual = x
        h = jnp.maximum(x @ params["w1"][i] + params["b1"][i], 0.0)
        x = h @ params["w2"][i] + params["b2"][i] + residual
        x = _layer_norm(x, params["ln2_g"][i], params["ln2_b"][i])
    return x


# ----------------------------- deterministic init -----------------------------
def init_params(key, *, n_layers, n_head, d_k, d_v, d_model, d_inner):
    ks = jax.random.split(key, 4 + 2 * n_layers)
    scale = 0.05
    params = {
        # attention weights are shared across layers (as in the PyTorch Encoder)
        "wq": scale * jax.random.normal(ks[0], (d_model, n_head * d_k), jnp.float32),
        "wk": scale * jax.random.normal(ks[1], (d_model, n_head * d_k), jnp.float32),
        "wv": scale * jax.random.normal(ks[2], (d_model, n_head * d_v), jnp.float32),
        "wo": scale * jax.random.normal(ks[3], (n_head * d_v, d_model), jnp.float32),
        "ln1_g": jnp.ones((1, d_model), jnp.float32),
        "ln1_b": jnp.zeros((1, d_model), jnp.float32),
    }
    w1, b1, w2, b2, g2, be2 = [], [], [], [], [], []
    for i in range(n_layers):
        k1, k2 = ks[4 + 2 * i], ks[5 + 2 * i]
        w1.append(scale * jax.random.normal(k1, (d_model, d_inner), jnp.float32))
        b1.append(jnp.zeros((1, d_inner), jnp.float32))
        w2.append(scale * jax.random.normal(k2, (d_inner, d_model), jnp.float32))
        b2.append(jnp.zeros((1, d_model), jnp.float32))
        g2.append(jnp.ones((1, d_model), jnp.float32))
        be2.append(jnp.zeros((1, d_model), jnp.float32))
    params.update({
        "w1": jnp.stack(w1), "b1": jnp.stack(b1),       # (n_layers, D, d_inner), (n_layers, 1, d_inner)
        "w2": jnp.stack(w2), "b2": jnp.stack(b2),       # (n_layers, d_inner, D), (n_layers, 1, D)
        "ln2_g": jnp.stack(g2), "ln2_b": jnp.stack(be2) # (n_layers, 1, D)
    })
    return params


if __name__ == "__main__":
    # Small config consistent with the module: n_layers=2, n_head=4, d_k=d_v=8,
    # d_model=32, d_inner=64, dropout=0.1 (eval -> identity), pre_LN=False.
    n_layers, n_head, d_k, d_v = 2, 4, 8, 8
    d_model, d_inner = 32, 64
    B, L = 2, 8

    key = jax.random.PRNGKey(0)
    k_x, k_p = jax.random.split(key)
    x = jax.random.normal(k_x, (B, L, d_model), jnp.float32)
    params = init_params(k_p, n_layers=n_layers, n_head=n_head, d_k=d_k,
                         d_v=d_v, d_model=d_model, d_inner=d_inner)

    out = encoder_forward(x, params, n_layers=n_layers, n_head=n_head,
                          d_k=d_k, d_v=d_v)
    out = jax.block_until_ready(out)

    ref = encoder_ref(x, params, n_layers=n_layers, n_head=n_head,
                      d_k=d_k, d_v=d_v)
    assert out.shape == (B, L, d_model)
    # approx softmax reciprocal in the kernel -> slightly looser tolerance than exact.
    assert jnp.allclose(out, ref, atol=5e-3, rtol=5e-3), "mismatch vs reference"

    print("KERNEL_OK")
</pallas_src>

<mosaic_0001>
module attributes {stable_mosaic.version = 11 : i64} {
  func.func @encoder_kernel(%arg0: i32, %arg1: memref<1x8x32xf32, #tpu.memory_space<vmem>>, %arg2: memref<32x96xf32, #tpu.memory_space<vmem>>, %arg3: memref<32x32xf32, #tpu.memory_space<vmem>>, %arg4: memref<1x32xf32, #tpu.memory_space<vmem>>, %arg5: memref<1x32xf32, #tpu.memory_space<vmem>>, %arg6: memref<2x32x64xf32, #tpu.memory_space<vmem>>, %arg7: memref<2x1x64xf32, #tpu.memory_space<vmem>>, %arg8: memref<2x64x32xf32, #tpu.memory_space<vmem>>, %arg9: memref<2x1x32xf32, #tpu.memory_space<vmem>>, %arg10: memref<2x1x32xf32, #tpu.memory_space<vmem>>, %arg11: memref<2x1x32xf32, #tpu.memory_space<vmem>>, %arg12: memref<1x8x32xf32, #tpu.memory_space<vmem>>) attributes {dimension_semantics = [#tpu.dimension_semantics<parallel>], iteration_bounds = array<i64: 2>, scalar_prefetch = 0 : i64, scratch_operands = 0 : i64, tpu.core_type = #tpu.core_type<tc>, window_params = [{transform_indices = @transform_0, window_bounds = array<i64: 1, 8, 32>}, {pipeline_mode = #tpu.pipeline_mode<synchronous>, transform_indices = @transform_1, window_bounds = array<i64: 32, 96>}, {pipeline_mode = #tpu.pipeline_mode<synchronous>, transform_indices = @transform_2, window_bounds = array<i64: 32, 32>}, {pipeline_mode = #tpu.pipeline_mode<synchronous>, transform_indices = @transform_3, window_bounds = array<i64: 1, 32>}, {pipeline_mode = #tpu.pipeline_mode<synchronous>, transform_indices = @transform_4, window_bounds = array<i64: 1, 32>}, {pipeline_mode = #tpu.pipeline_mode<synchronous>, transform_indices = @transform_5, window_bounds = array<i64: 2, 32, 64>}, {pipeline_mode = #tpu.pipeline_mode<synchronous>, transform_indices = @transform_6, window_bounds = array<i64: 2, 1, 64>}, {pipeline_mode = #tpu.pipeline_mode<synchronous>, transform_indices = @transform_7, window_bounds = array<i64: 2, 64, 32>}, {pipeline_mode = #tpu.pipeline_mode<synchronous>, transform_indices = @transform_8, window_bounds = array<i64: 2, 1, 32>}, {pipeline_mode = #tpu.pipeline_mode<synchronous>, transform_indices = @transform_9, window_bounds = array<i64: 2, 1, 32>}, {pipeline_mode = #tpu.pipeline_mode<synchronous>, transform_indices = @transform_10, window_bounds = array<i64: 2, 1, 32>}, {transform_indices = @transform_11, window_bounds = array<i64: 1, 8, 32>}]} {
    %c0 = arith.constant 0 : index
    %c0_0 = arith.constant 0 : index
    %c0_1 = arith.constant 0 : index
    %0 = vector.load %arg1[%c0, %c0_0, %c0_1] : memref<1x8x32xf32, #tpu.memory_space<vmem>>, vector<1x8x32xf32>
    %1 = vector.shape_cast %0 : vector<1x8x32xf32> to vector<8x32xf32>
    %c0_2 = arith.constant 0 : index
    %c0_3 = arith.constant 0 : index
    %2 = vector.load %arg2[%c0_2, %c0_3] : memref<32x96xf32, #tpu.memory_space<vmem>>, vector<32x96xf32>
    %c0_4 = arith.constant 0 : index
    %c0_5 = arith.constant 0 : index
    %3 = vector.load %arg4[%c0_4, %c0_5] : memref<1x32xf32, #tpu.memory_space<vmem>>, vector<1x32xf32>
    %c0_6 = arith.constant 0 : index
    %c0_7 = arith.constant 0 : index
    %4 = vector.load %arg5[%c0_6, %c0_7] : memref<1x32xf32, #tpu.memory_space<vmem>>, vector<1x32xf32>
    %cst = arith.constant dense<0.000000e+00> : vector<8x96xf32>
    %5 = tpu.matmul %1, %2, %cst {dimension_numbers = #tpu.dot_dimension_numbers<[1], [0], [0], [1], [0, 0, 1, 1], [], []>} : vector<8x32xf32>, vector<32x96xf32>, vector<8x96xf32> -> vector<8x96xf32>
    %6 = vector.extract_strided_slice %5 {offsets = [0, 0], sizes = [8, 32], strides = [1, 1]} : vector<8x96xf32> to vector<8x32xf32>
    %7 = vector.extract_strided_slice %5 {offsets = [0, 32], sizes = [8, 32], strides = [1, 1]} : vector<8x96xf32> to vector<8x32xf32>
    %8 = vector.extract_strided_slice %5 {offsets = [0, 64], sizes = [8, 32], strides = [1, 1]} : vector<8x96xf32> to vector<8x32xf32>
    %9 = vector.extract_strided_slice %6 {offsets = [0, 0], sizes = [8, 8], strides = [1, 1]} : vector<8x32xf32> to vector<8x8xf32>
    %10 = vector.extract_strided_slice %7 {offsets = [0, 0], sizes = [8, 8], strides = [1, 1]} : vector<8x32xf32> to vector<8x8xf32>
    %11 = vector.extract_strided_slice %8 {offsets = [0, 0], sizes = [8, 8], strides = [1, 1]} : vector<8x32xf32> to vector<8x8xf32>
    %cst_8 = arith.constant dense<0.000000e+00> : vector<8x8xf32>
    %12 = tpu.matmul %9, %10, %cst_8 {dimension_numbers = #tpu.dot_dimension_numbers<[1], [1], [0], [0], [0, 0, 1, 0], [], []>} : vector<8x8xf32>, vector<8x8xf32>, vector<8x8xf32> -> vector<8x8xf32>
    %cst_9 = arith.constant dense<0xFF800000> : vector<8xf32>
    %13 = vector.multi_reduction <maximumf>, %12, %cst_9 [1] : vector<8x8xf32> to vector<8xf32>
    %14 = vector.shape_cast %13 : vector<8xf32> to vector<8x1xf32>
    %15 = vector.broadcast %14 : vector<8x1xf32> to vector<8x8xf32>
    %16 = arith.subf %12, %15 : vector<8x8xf32>
    %17 = math.exp %16 : vector<8x8xf32>
    %cst_10 = arith.constant dense<0.000000e+00> : vector<8xf32>
    %18 = vector.multi_reduction <add>, %17, %cst_10 [1] : vector<8x8xf32> to vector<8xf32>
    %19 = vector.shape_cast %18 : vector<8xf32> to vector<8x1xf32>
    %20 = tpu.reciprocal %19 {approx = true} : vector<8x1xf32> -> vector<8x1xf32>
    %21 = vector.broadcast %20 : vector<8x1xf32> to vector<8x8xf32>
    %22 = arith.mulf %17, %21 : vector<8x8xf32>
    %cst_11 = arith.constant dense<0.000000e+00> : vector<8x8xf32>
    %23 = tpu.matmul %22, %11, %cst_11 {dimension_numbers = #tpu.dot_dimension_numbers<[1], [0], [0], [1], [0, 0, 1, 1], [], []>} : vector<8x8xf32>, vector<8x8xf32>, vector<8x8xf32> -> vector<8x8xf32>
    %c0_12 = arith.constant 0 : index
    %c0_13 = arith.constant 0 : index
    %24 = vector.load %arg3[%c0_12, %c0_13] : memref<32x32xf32, #tpu.memory_space<vmem>>, vector<8x32xf32>
    %cst_14 = arith.constant dense<0.000000e+00> : vector<8x32xf32>
    %25 = tpu.matmul %23, %24, %cst_14 {dimension_numbers = #tpu.dot_dimension_numbers<[1], [0], [0], [1], [0, 0, 1, 1], [], []>} : vector<8x8xf32>, vector<8x32xf32>, vector<8x32xf32> -> vector<8x32xf32>
    %26 = vector.extract_strided_slice %6 {offsets = [0, 8], sizes = [8, 8], strides = [1, 1]} : vector<8x32xf32> to vector<8x8xf32>
    %27 = vector.extract_strided_slice %7 {offsets = [0, 8], sizes = [8, 8], strides = [1, 1]} : vector<8x32xf32> to vector<8x8xf32>
    %28 = vector.extract_strided_slice %8 {offsets = [0, 8], sizes = [8, 8], strides = [1, 1]} : vector<8x32xf32> to vector<8x8xf32>
    %cst_15 = arith.constant dense<0.000000e+00> : vector<8x8xf32>
    %29 = tpu.matmul %26, %27, %cst_15 {dimension_numbers = #tpu.dot_dimension_numbers<[1], [1], [0], [0], [0, 0, 1, 0], [], []>} : vector<8x8xf32>, vector<8x8xf32>, vector<8x8xf32> -> vector<8x8xf32>
    %cst_16 = arith.constant dense<0xFF800000> : vector<8xf32>
    %30 = vector.multi_reduction <maximumf>, %29, %cst_16 [1] : vector<8x8xf32> to vector<8xf32>
    %31 = vector.shape_cast %30 : vector<8xf32> to vector<8x1xf32>
    %32 = vector.broadcast %31 : vector<8x1xf32> to vector<8x8xf32>
    %33 = arith.subf %29, %32 : vector<8x8xf32>
    %34 = math.exp %33 : vector<8x8xf32>
    %cst_17 = arith.constant dense<0.000000e+00> : vector<8xf32>
    %35 = vector.multi_reduction <add>, %34, %cst_17 [1] : vector<8x8xf32> to vector<8xf32>
    %36 = vector.shape_cast %35 : vector<8xf32> to vector<8x1xf32>
    %37 = tpu.reciprocal %36 {approx = true} : vector<8x1xf32> -> vector<8x1xf32>
    %38 = vector.broadcast %37 : vector<8x1xf32> to vector<8x8xf32>
    %39 = arith.mulf %34, %38 : vector<8x8xf32>
    %cst_18 = arith.constant dense<0.000000e+00> : vector<8x8xf32>
    %40 = tpu.matmul %39, %28, %cst_18 {dimension_numbers = #tpu.dot_dimension_numbers<[1], [0], [0], [1], [0, 0, 1, 1], [], []>} : vector<8x8xf32>, vector<8x8xf32>, vector<8x8xf32> -> vector<8x8xf32>
    %c8 = arith.constant 8 : index
    %c0_19 = arith.constant 0 : index
    %41 = vector.load %arg3[%c8, %c0_19] : memref<32x32xf32, #tpu.memory_space<vmem>>, vector<8x32xf32>
    %cst_20 = arith.constant dense<0.000000e+00> : vector<8x32xf32>
    %42 = tpu.matmul %40, %41, %cst_20 {dimension_numbers = #tpu.dot_dimension_numbers<[1], [0], [0], [1], [0, 0, 1, 1], [], []>} : vector<8x8xf32>, vector<8x32xf32>, vector<8x32xf32> -> vector<8x32xf32>
    %43 = arith.addf %25, %42 : vector<8x32xf32>
    %44 = vector.extract_strided_slice %6 {offsets = [0, 16], sizes = [8, 8], strides = [1, 1]} : vector<8x32xf32> to vector<8x8xf32>
    %45 = vector.extract_strided_slice %7 {offsets = [0, 16], sizes = [8, 8], strides = [1, 1]} : vector<8x32xf32> to vector<8x8xf32>
    %46 = vector.extract_strided_slice %8 {offsets = [0, 16], sizes = [8, 8], strides = [1, 1]} : vector<8x32xf32> to vector<8x8xf32>
    %cst_21 = arith.constant dense<0.000000e+00> : vector<8x8xf32>
    %47 = tpu.matmul %44, %45, %cst_21 {dimension_numbers = #tpu.dot_dimension_numbers<[1], [1], [0], [0], [0, 0, 1, 0], [], []>} : vector<8x8xf32>, vector<8x8xf32>, vector<8x8xf32> -> vector<8x8xf32>
    %cst_22 = arith.constant dense<0xFF800000> : vector<8xf32>
    %48 = vector.multi_reduction <maximumf>, %47, %cst_22 [1] : vector<8x8xf32> to vector<8xf32>
    %49 = vector.shape_cast %48 : vector<8xf32> to vector<8x1xf32>
    %50 = vector.broadcast %49 : vector<8x1xf32> to vector<8x8xf32>
    %51 = arith.subf %47, %50 : vector<8x8xf32>
    %52 = math.exp %51 : vector<8x8xf32>
    %cst_23 = arith.constant dense<0.000000e+00> : vector<8xf32>
    %53 = vector.multi_reduction <add>, %52, %cst_23 [1] : vector<8x8xf32> to vector<8xf32>
    %54 = vector.shape_cast %53 : vector<8xf32> to vector<8x1xf32>
    %55 = tpu.reciprocal %54 {approx = true} : vector<8x1xf32> -> vector<8x1xf32>
    %56 = vector.broadcast %55 : vector<8x1xf32> to vector<8x8xf32>
    %57 = arith.mulf %52, %56 : vector<8x8xf32>
    %cst_24 = arith.constant dense<0.000000e+00> : vector<8x8xf32>
    %58 = tpu.matmul %57, %46, %cst_24 {dimension_numbers = #tpu.dot_dimension_numbers<[1], [0], [0], [1], [0, 0, 1, 1], [], []>} : vector<8x8xf32>, vector<8x8xf32>, vector<8x8xf32> -> vector<8x8xf32>
    %c16 = arith.constant 16 : index
    %c0_25 = arith.constant 0 : index
    %59 = vector.load %arg3[%c16, %c0_25] : memref<32x32xf32, #tpu.memory_space<vmem>>, vector<8x32xf32>
    %cst_26 = arith.constant dense<0.000000e+00> : vector<8x32xf32>
    %60 = tpu.matmul %58, %59, %cst_26 {dimension_numbers = #tpu.dot_dimension_numbers<[1], [0], [0], [1], [0, 0, 1, 1], [], []>} : vector<8x8xf32>, vector<8x32xf32>, vector<8x32xf32> -> vector<8x32xf32>
    %61 = arith.addf %43, %60 : vector<8x32xf32>
    %62 = vector.extract_strided_slice %6 {offsets = [0, 24], sizes = [8, 8], strides = [1, 1]} : vector<8x32xf32> to vector<8x8xf32>
    %63 = vector.extract_strided_slice %7 {offsets = [0, 24], sizes = [8, 8], strides = [1, 1]} : vector<8x32xf32> to vector<8x8xf32>
    %64 = vector.extract_strided_slice %8 {offsets = [0, 24], sizes = [8, 8], strides = [1, 1]} : vector<8x32xf32> to vector<8x8xf32>
    %cst_27 = arith.constant dense<0.000000e+00> : vector<8x8xf32>
    %65 = tpu.matmul %62, %63, %cst_27 {dimension_numbers = #tpu.dot_dimension_numbers<[1], [1], [0], [0], [0, 0, 1, 0], [], []>} : vector<8x8xf32>, vector<8x8xf32>, vector<8x8xf32> -> vector<8x8xf32>
    %cst_28 = arith.constant dense<0xFF800000> : vector<8xf32>
    %66 = vector.multi_reduction <maximumf>, %65, %cst_28 [1] : vector<8x8xf32> to vector<8xf32>
    %67 = vector.shape_cast %66 : vector<8xf32> to vector<8x1xf32>
    %68 = vector.broadcast %67 : vector<8x1xf32> to vector<8x8xf32>
    %69 = arith.subf %65, %68 : vector<8x8xf32>
    %70 = math.exp %69 : vector<8x8xf32>
    %cst_29 = arith.constant dense<0.000000e+00> : vector<8xf32>
    %71 = vector.multi_reduction <add>, %70, %cst_29 [1] : vector<8x8xf32> to vector<8xf32>
    %72 = vector.shape_cast %71 : vector<8xf32> to vector<8x1xf32>
    %73 = tpu.reciprocal %72 {approx = true} : vector<8x1xf32> -> vector<8x1xf32>
    %74 = vector.broadcast %73 : vector<8x1xf32> to vector<8x8xf32>
    %75 = arith.mulf %70, %74 : vector<8x8xf32>
    %cst_30 = arith.constant dense<0.000000e+00> : vector<8x8xf32>
    %76 = tpu.matmul %75, %64, %cst_30 {dimension_numbers = #tpu.dot_dimension_numbers<[1], [0], [0], [1], [0, 0, 1, 1], [], []>} : vector<8x8xf32>, vector<8x8xf32>, vector<8x8xf32> -> vector<8x8xf32>
    %c24 = arith.constant 24 : index
    %c0_31 = arith.constant 0 : index
    %77 = vector.load %arg3[%c24, %c0_31] : memref<32x32xf32, #tpu.memory_space<vmem>>, vector<8x32xf32>
    %cst_32 = arith.constant dense<0.000000e+00> : vector<8x32xf32>
    %78 = tpu.matmul %76, %77, %cst_32 {dimension_numbers = #tpu.dot_dimension_numbers<[1], [0], [0], [1], [0, 0, 1, 1], [], []>} : vector<8x8xf32>, vector<8x32xf32>, vector<8x32xf32> -> vector<8x32xf32>
    %79 = arith.addf %61, %78 : vector<8x32xf32>
    %80 = arith.addf %79, %1 : vector<8x32xf32>
    %cst_33 = arith.constant dense<0.000000e+00> : vector<8xf32>
    %81 = vector.multi_reduction <add>, %80, %cst_33 [1] : vector<8x32xf32> to vector<8xf32>
    %82 = vector.shape_cast %81 : vector<8xf32> to vector<8x1xf32>
    %cst_34 = arith.constant 3.200000e+01 : f32
    %83 = vector.broadcast %cst_34 : f32 to vector<8x1xf32>
    %84 = arith.divf %82, %83 : vector<8x1xf32>
    %85 = vector.broadcast %84 : vector<8x1xf32> to vector<8x32xf32>
    %86 = arith.subf %80, %85 : vector<8x32xf32>
    %87 = arith.mulf %86, %86 : vector<8x32xf32>
    %cst_35 = arith.constant dense<0.000000e+00> : vector<8xf32>
    %88 = vector.multi_reduction <add>, %87, %cst_35 [1] : vector<8x32xf32> to vector<8xf32>
    %89 = vector.shape_cast %88 : vector<8xf32> to vector<8x1xf32>
    %cst_36 = arith.constant 3.200000e+01 : f32
    %90 = vector.broadcast %cst_36 : f32 to vector<8x1xf32>
    %91 = arith.divf %89, %90 : vector<8x1xf32>
    %92 = vector.broadcast %84 : vector<8x1xf32> to vector<8x32xf32>
    %93 = arith.subf %80, %92 : vector<8x32xf32>
    %cst_37 = arith.constant 9.99999997E-7 : f32
    %94 = vector.broadcast %cst_37 : f32 to vector<8x1xf32>
    %95 = arith.addf %91, %94 : vector<8x1xf32>
    %96 = math.rsqrt %95 : vector<8x1xf32>
    %97 = vector.broadcast %96 : vector<8x1xf32> to vector<8x32xf32>
    %98 = arith.mulf %93, %97 : vector<8x32xf32>
    %99 = vector.broadcast %3 : vector<1x32xf32> to vector<8x32xf32>
    %100 = arith.mulf %98, %99 : vector<8x32xf32>
    %101 = vector.broadcast %4 : vector<1x32xf32> to vector<8x32xf32>
    %102 = arith.addf %100, %101 : vector<8x32xf32>
    %c0_38 = arith.constant 0 : index
    %c0_39 = arith.constant 0 : index
    %c0_40 = arith.constant 0 : index
    %103 = vector.load %arg6[%c0_38, %c0_39, %c0_40] : memref<2x32x64xf32, #tpu.memory_space<vmem>>, vector<1x32x64xf32>
    %104 = vector.shape_cast %103 : vector<1x32x64xf32> to vector<32x64xf32>
    %cst_41 = arith.constant dense<0.000000e+00> : vector<8x64xf32>
    %105 = tpu.matmul %102, %104, %cst_41 {dimension_numbers = #tpu.dot_dimension_numbers<[1], [0], [0], [1], [0, 0, 1, 1], [], []>} : vector<8x32xf32>, vector<32x64xf32>, vector<8x64xf32> -> vector<8x64xf32>
    %c0_42 = arith.constant 0 : index
    %c0_43 = arith.constant 0 : index
    %c0_44 = arith.constant 0 : index
    %106 = vector.load %arg7[%c0_42, %c0_43, %c0_44] : memref<2x1x64xf32, #tpu.memory_space<vmem>>, vector<1x1x64xf32>
    %107 = vector.shape_cast %106 : vector<1x1x64xf32> to vector<1x64xf32>
    %108 = vector.broadcast %107 : vector<1x64xf32> to vector<8x64xf32>
    %109 = arith.addf %105, %108 : vector<8x64xf32>
    %cst_45 = arith.constant 0.000000e+00 : f32
    %110 = vector.broadcast %cst_45 : f32 to vector<8x64xf32>
    %111 = arith.maximumf %109, %110 : vector<8x64xf32>
    %c0_46 = arith.constant 0 : index
    %c0_47 = arith.constant 0 : index
    %c0_48 = arith.constant 0 : index
    %112 = vector.load %arg8[%c0_46, %c0_47, %c0_48] : memref<2x64x32xf32, #tpu.memory_space<vmem>>, vector<1x64x32xf32>
    %113 = vector.shape_cast %112 : vector<1x64x32xf32> to vector<64x32xf32>
    %cst_49 = arith.constant dense<0.000000e+00> : vector<8x32xf32>
    %114 = tpu.matmul %111, %113, %cst_49 {dimension_numbers = #tpu.dot_dimension_numbers<[1], [0], [0], [1], [0, 0, 1, 1], [], []>} : vector<8x64xf32>, vector<64x32xf32>, vector<8x32xf32> -> vector<8x32xf32>
    %c0_50 = arith.constant 0 : index
    %c0_51 = arith.constant 0 : index
    %c0_52 = arith.constant 0 : index
    %115 = vector.load %arg9[%c0_50, %c0_51, %c0_52] : memref<2x1x32xf32, #tpu.memory_space<vmem>>, vector<1x1x32xf32>
    %116 = vector.shape_cast %115 : vector<1x1x32xf32> to vector<1x32xf32>
    %117 = vector.broadcast %116 : vector<1x32xf32> to vector<8x32xf32>
    %118 = arith.addf %114, %117 : vector<8x32xf32>
    %119 = arith.addf %118, %102 : vector<8x32xf32>
    %c0_53 = arith.constant 0 : index
    %c0_54 = arith.constant 0 : index
    %c0_55 = arith.constant 0 : index
    %120 = vector.load %arg10[%c0_53, %c0_54, %c0_55] : memref<2x1x32xf32, #tpu.memory_space<vmem>>, vector<1x1x32xf32>
    %121 = vector.shape_cast %120 : vector<1x1x32xf32> to vector<1x32xf32>
    %c0_56 = arith.constant 0 : index
    %c0_57 = arith.constant 0 : index
    %c0_58 = arith.constant 0 : index
    %122 = vector.load %arg11[%c0_56, %c0_57, %c0_58] : memref<2x1x32xf32, #tpu.memory_space<vmem>>, vector<1x1x32xf32>
    %123 = vector.shape_cast %122 : vector<1x1x32xf32> to vector<1x32xf32>
    %cst_59 = arith.constant dense<0.000000e+00> : vector<8xf32>
    %124 = vector.multi_reduction <add>, %119, %cst_59 [1] : vector<8x32xf32> to vector<8xf32>
    %125 = vector.shape_cast %124 : vector<8xf32> to vector<8x1xf32>
    %cst_60 = arith.constant 3.200000e+01 : f32
    %126 = vector.broadcast %cst_60 : f32 to vector<8x1xf32>
    %127 = arith.divf %125, %126 : vector<8x1xf32>
    %128 = vector.broadcast %127 : vector<8x1xf32> to vector<8x32xf32>
    %129 = arith.subf %119, %128 : vector<8x32xf32>
    %130 = arith.mulf %129, %129 : vector<8x32xf32>
    %cst_61 = arith.constant dense<0.000000e+00> : vector<8xf32>
    %131 = vector.multi_reduction <add>, %130, %cst_61 [1] : vector<8x32xf32> to vector<8xf32>
    %132 = vector.shape_cast %131 : vector<8xf32> to vector<8x1xf32>
    %cst_62 = arith.constant 3.200000e+01 : f32
    %133 = vector.broadcast %cst_62 : f32 to vector<8x1xf32>
    %134 = arith.divf %132, %133 : vector<8x1xf32>
    %135 = vector.broadcast %127 : vector<8x1xf32> to vector<8x32xf32>
    %136 = arith.subf %119, %135 : vector<8x32xf32>
    %cst_63 = arith.constant 9.99999997E-7 : f32
    %137 = vector.broadcast %cst_63 : f32 to vector<8x1xf32>
    %138 = arith.addf %134, %137 : vector<8x1xf32>
    %139 = math.rsqrt %138 : vector<8x1xf32>
    %140 = vector.broadcast %139 : vector<8x1xf32> to vector<8x32xf32>
    %141 = arith.mulf %136, %140 : vector<8x32xf32>
    %142 = vector.broadcast %121 : vector<1x32xf32> to vector<8x32xf32>
    %143 = arith.mulf %141, %142 : vector<8x32xf32>
    %144 = vector.broadcast %123 : vector<1x32xf32> to vector<8x32xf32>
    %145 = arith.addf %143, %144 : vector<8x32xf32>
    %cst_64 = arith.constant dense<0.000000e+00> : vector<8x96xf32>
    %146 = tpu.matmul %145, %2, %cst_64 {dimension_numbers = #tpu.dot_dimension_numbers<[1], [0], [0], [1], [0, 0, 1, 1], [], []>} : vector<8x32xf32>, vector<32x96xf32>, vector<8x96xf32> -> vector<8x96xf32>
    %147 = vector.extract_strided_slice %146 {offsets = [0, 0], sizes = [8, 32], strides = [1, 1]} : vector<8x96xf32> to vector<8x32xf32>
    %148 = vector.extract_strided_slice %146 {offsets = [0, 32], sizes = [8, 32], strides = [1, 1]} : vector<8x96xf32> to vector<8x32xf32>
    %149 = vector.extract_strided_slice %146 {offsets = [0, 64], sizes = [8, 32], strides = [1, 1]} : vector<8x96xf32> to vector<8x32xf32>
    %150 = vector.extract_strided_slice %147 {offsets = [0, 0], sizes = [8, 8], strides = [1, 1]} : vector<8x32xf32> to vector<8x8xf32>
    %151 = vector.extract_strided_slice %148 {offsets = [0, 0], sizes = [8, 8], strides = [1, 1]} : vector<8x32xf32> to vector<8x8xf32>
    %152 = vector.extract_strided_slice %149 {offsets = [0, 0], sizes = [8, 8], strides = [1, 1]} : vector<8x32xf32> to vector<8x8xf32>
    %cst_65 = arith.constant dense<0.000000e+00> : vector<8x8xf32>
    %153 = tpu.matmul %150, %151, %cst_65 {dimension_numbers = #tpu.dot_dimension_numbers<[1], [1], [0], [0], [0, 0, 1, 0], [], []>} : vector<8x8xf32>, vector<8x8xf32>, vector<8x8xf32> -> vector<8x8xf32>
    %cst_66 = arith.constant dense<0xFF800000> : vector<8xf32>
    %154 = vector.multi_reduction <maximumf>, %153, %cst_66 [1] : vector<8x8xf32> to vector<8xf32>
    %155 = vector.shape_cast %154 : vector<8xf32> to vector<8x1xf32>
    %156 = vector.broadcast %155 : vector<8x1xf32> to vector<8x8xf32>
    %157 = arith.subf %153, %156 : vector<8x8xf32>
    %158 = math.exp %157 : vector<8x8xf32>
    %cst_67 = arith.constant dense<0.000000e+00> : vector<8xf32>
    %159 = vector.multi_reduction <add>, %158, %cst_67 [1] : vector<8x8xf32> to vector<8xf32>
    %160 = vector.shape_cast %159 : vector<8xf32> to vector<8x1xf32>
    %161 = tpu.reciprocal %160 {approx = true} : vector<8x1xf32> -> vector<8x1xf32>
    %162 = vector.broadcast %161 : vector<8x1xf32> to vector<8x8xf32>
    %163 = arith.mulf %158, %162 : vector<8x8xf32>
    %cst_68 = arith.constant dense<0.000000e+00> : vector<8x8xf32>
    %164 = tpu.matmul %163, %152, %cst_68 {dimension_numbers = #tpu.dot_dimension_numbers<[1], [0], [0], [1], [0, 0, 1, 1], [], []>} : vector<8x8xf32>, vector<8x8xf32>, vector<8x8xf32> -> vector<8x8xf32>
    %c0_69 = arith.constant 0 : index
    %c0_70 = arith.constant 0 : index
    %165 = vector.load %arg3[%c0_69, %c0_70] : memref<32x32xf32, #tpu.memory_space<vmem>>, vector<8x32xf32>
    %cst_71 = arith.constant dense<0.000000e+00> : vector<8x32xf32>
    %166 = tpu.matmul %164, %165, %cst_71 {dimension_numbers = #tpu.dot_dimension_numbers<[1], [0], [0], [1], [0, 0, 1, 1], [], []>} : vector<8x8xf32>, vector<8x32xf32>, vector<8x32xf32> -> vector<8x32xf32>
    %167 = vector.extract_strided_slice %147 {offsets = [0, 8], sizes = [8, 8], strides = [1, 1]} : vector<8x32xf32> to vector<8x8xf32>
    %168 = vector.extract_strided_slice %148 {offsets = [0, 8], sizes = [8, 8], strides = [1, 1]} : vector<8x32xf32> to vector<8x8xf32>
    %169 = vector.extract_strided_slice %149 {offsets = [0, 8], sizes = [8, 8], strides = [1, 1]} : vector<8x32xf32> to vector<8x8xf32>
    %cst_72 = arith.constant dense<0.000000e+00> : vector<8x8xf32>
    %170 = tpu.matmul %167, %168, %cst_72 {dimension_numbers = #tpu.dot_dimension_numbers<[1], [1], [0], [0], [0, 0, 1, 0], [], []>} : vector<8x8xf32>, vector<8x8xf32>, vector<8x8xf32> -> vector<8x8xf32>
    %cst_73 = arith.constant dense<0xFF800000> : vector<8xf32>
    %171 = vector.multi_reduction <maximumf>, %170, %cst_73 [1] : vector<8x8xf32> to vector<8xf32>
    %172 = vector.shape_cast %171 : vector<8xf32> to vector<8x1xf32>
    %173 = vector.broadcast %172 : vector<8x1xf32> to vector<8x8xf32>
    %174 = arith.subf %170, %173 : vector<8x8xf32>
    %175 = math.exp %174 : vector<8x8xf32>
    %cst_74 = arith.constant dense<0.000000e+00> : vector<8xf32>
    %176 = vector.multi_reduction <add>, %175, %cst_74 [1] : vector<8x8xf32> to vector<8xf32>
    %177 = vector.shape_cast %176 : vector<8xf32> to vector<8x1xf32>
    %178 = tpu.reciprocal %177 {approx = true} : vector<8x1xf32> -> vector<8x1xf32>
    %179 = vector.broadcast %178 : vector<8x1xf32> to vector<8x8xf32>
    %180 = arith.mulf %175, %179 : vector<8x8xf32>
    %cst_75 = arith.constant dense<0.000000e+00> : vector<8x8xf32>
    %181 = tpu.matmul %180, %169, %cst_75 {dimension_numbers = #tpu.dot_dimension_numbers<[1], [0], [0], [1], [0, 0, 1, 1], [], []>} : vector<8x8xf32>, vector<8x8xf32>, vector<8x8xf32> -> vector<8x8xf32>
    %c8_76 = arith.constant 8 : index
    %c0_77 = arith.constant 0 : index
    %182 = vector.load %arg3[%c8_76, %c0_77] : memref<32x32xf32, #tpu.memory_space<vmem>>, vector<8x32xf32>
    %cst_78 = arith.constant dense<0.000000e+00> : vector<8x32xf32>
    %183 = tpu.matmul %181, %182, %cst_78 {dimension_numbers = #tpu.dot_dimension_numbers<[1], [0], [0], [1], [0, 0, 1, 1], [], []>} : vector<8x8xf32>, vector<8x32xf32>, vector<8x32xf32> -> vector<8x32xf32>
    %184 = arith.addf %166, %183 : vector<8x32xf32>
    %185 = vector.extract_strided_slice %147 {offsets = [0, 16], sizes = [8, 8], strides = [1, 1]} : vector<8x32xf32> to vector<8x8xf32>
    %186 = vector.extract_strided_slice %148 {offsets = [0, 16], sizes = [8, 8], strides = [1, 1]} : vector<8x32xf32> to vector<8x8xf32>
    %187 = vector.extract_strided_slice %149 {offsets = [0, 16], sizes = [8, 8], strides = [1, 1]} : vector<8x32xf32> to vector<8x8xf32>
    %cst_79 = arith.constant dense<0.000000e+00> : vector<8x8xf32>
    %188 = tpu.matmul %185, %186, %cst_79 {dimension_numbers = #tpu.dot_dimension_numbers<[1], [1], [0], [0], [0, 0, 1, 0], [], []>} : vector<8x8xf32>, vector<8x8xf32>, vector<8x8xf32> -> vector<8x8xf32>
    %cst_80 = arith.constant dense<0xFF800000> : vector<8xf32>
    %189 = vector.multi_reduction <maximumf>, %188, %cst_80 [1] : vector<8x8xf32> to vector<8xf32>
    %190 = vector.shape_cast %189 : vector<8xf32> to vector<8x1xf32>
    %191 = vector.broadcast %190 : vector<8x1xf32> to vector<8x8xf32>
    %192 = arith.subf %188, %191 : vector<8x8xf32>
    %193 = math.exp %192 : vector<8x8xf32>
    %cst_81 = arith.constant dense<0.000000e+00> : vector<8xf32>
    %194 = vector.multi_reduction <add>, %193, %cst_81 [1] : vector<8x8xf32> to vector<8xf32>
    %195 = vector.shape_cast %194 : vector<8xf32> to vector<8x1xf32>
    %196 = tpu.reciprocal %195 {approx = true} : vector<8x1xf32> -> vector<8x1xf32>
    %197 = vector.broadcast %196 : vector<8x1xf32> to vector<8x8xf32>
    %198 = arith.mulf %193, %197 : vector<8x8xf32>
    %cst_82 = arith.constant dense<0.000000e+00> : vector<8x8xf32>
    %199 = tpu.matmul %198, %187, %cst_82 {dimension_numbers = #tpu.dot_dimension_numbers<[1], [0], [0], [1], [0, 0, 1, 1], [], []>} : vector<8x8xf32>, vector<8x8xf32>, vector<8x8xf32> -> vector<8x8xf32>
    %c16_83 = arith.constant 16 : index
    %c0_84 = arith.constant 0 : index
    %200 = vector.load %arg3[%c16_83, %c0_84] : memref<32x32xf32, #tpu.memory_space<vmem>>, vector<8x32xf32>
    %cst_85 = arith.constant dense<0.000000e+00> : vector<8x32xf32>
    %201 = tpu.matmul %199, %200, %cst_85 {dimension_numbers = #tpu.dot_dimension_numbers<[1], [0], [0], [1], [0, 0, 1, 1], [], []>} : vector<8x8xf32>, vector<8x32xf32>, vector<8x32xf32> -> vector<8x32xf32>
    %202 = arith.addf %184, %201 : vector<8x32xf32>
    %203 = vector.extract_strided_slice %147 {offsets = [0, 24], sizes = [8, 8], strides = [1, 1]} : vector<8x32xf32> to vector<8x8xf32>
    %204 = vector.extract_strided_slice %148 {offsets = [0, 24], sizes = [8, 8], strides = [1, 1]} : vector<8x32xf32> to vector<8x8xf32>
    %205 = vector.extract_strided_slice %149 {offsets = [0, 24], sizes = [8, 8], strides = [1, 1]} : vector<8x32xf32> to vector<8x8xf32>
    %cst_86 = arith.constant dense<0.000000e+00> : vector<8x8xf32>
    %206 = tpu.matmul %203, %204, %cst_86 {dimension_numbers = #tpu.dot_dimension_numbers<[1], [1], [0], [0], [0, 0, 1, 0], [], []>} : vector<8x8xf32>, vector<8x8xf32>, vector<8x8xf32> -> vector<8x8xf32>
    %cst_87 = arith.constant dense<0xFF800000> : vector<8xf32>
    %207 = vector.multi_reduction <maximumf>, %206, %cst_87 [1] : vector<8x8xf32> to vector<8xf32>
    %208 = vector.shape_cast %207 : vector<8xf32> to vector<8x1xf32>
    %209 = vector.broadcast %208 : vector<8x1xf32> to vector<8x8xf32>
    %210 = arith.subf %206, %209 : vector<8x8xf32>
    %211 = math.exp %210 : vector<8x8xf32>
    %cst_88 = arith.constant dense<0.000000e+00> : vector<8xf32>
    %212 = vector.multi_reduction <add>, %211, %cst_88 [1] : vector<8x8xf32> to vector<8xf32>
    %213 = vector.shape_cast %212 : vector<8xf32> to vector<8x1xf32>
    %214 = tpu.reciprocal %213 {approx = true} : vector<8x1xf32> -> vector<8x1xf32>
    %215 = vector.broadcast %214 : vector<8x1xf32> to vector<8x8xf32>
    %216 = arith.mulf %211, %215 : vector<8x8xf32>
    %cst_89 = arith.constant dense<0.000000e+00> : vector<8x8xf32>
    %217 = tpu.matmul %216, %205, %cst_89 {dimension_numbers = #tpu.dot_dimension_numbers<[1], [0], [0], [1], [0, 0, 1, 1], [], []>} : vector<8x8xf32>, vector<8x8xf32>, vector<8x8xf32> -> vector<8x8xf32>
    %c24_90 = arith.constant 24 : index
    %c0_91 = arith.constant 0 : index
    %218 = vector.load %arg3[%c24_90, %c0_91] : memref<32x32xf32, #tpu.memory_space<vmem>>, vector<8x32xf32>
    %cst_92 = arith.constant dense<0.000000e+00> : vector<8x32xf32>
    %219 = tpu.matmul %217, %218, %cst_92 {dimension_numbers = #tpu.dot_dimension_numbers<[1], [0], [0], [1], [0, 0, 1, 1], [], []>} : vector<8x8xf32>, vector<8x32xf32>, vector<8x32xf32> -> vector<8x32xf32>
    %220 = arith.addf %202, %219 : vector<8x32xf32>
    %221 = arith.addf %220, %145 : vector<8x32xf32>
    %cst_93 = arith.constant dense<0.000000e+00> : vector<8xf32>
    %222 = vector.multi_reduction <add>, %221, %cst_93 [1] : vector<8x32xf32> to vector<8xf32>
    %223 = vector.shape_cast %222 : vector<8xf32> to vector<8x1xf32>
    %cst_94 = arith.constant 3.200000e+01 : f32
    %224 = vector.broadcast %cst_94 : f32 to vector<8x1xf32>
    %225 = arith.divf %223, %224 : vector<8x1xf32>
    %226 = vector.broadcast %225 : vector<8x1xf32> to vector<8x32xf32>
    %227 = arith.subf %221, %226 : vector<8x32xf32>
    %228 = arith.mulf %227, %227 : vector<8x32xf32>
    %cst_95 = arith.constant dense<0.000000e+00> : vector<8xf32>
    %229 = vector.multi_reduction <add>, %228, %cst_95 [1] : vector<8x32xf32> to vector<8xf32>
    %230 = vector.shape_cast %229 : vector<8xf32> to vector<8x1xf32>
    %cst_96 = arith.constant 3.200000e+01 : f32
    %231 = vector.broadcast %cst_96 : f32 to vector<8x1xf32>
    %232 = arith.divf %230, %231 : vector<8x1xf32>
    %233 = vector.broadcast %225 : vector<8x1xf32> to vector<8x32xf32>
    %234 = arith.subf %221, %233 : vector<8x32xf32>
    %cst_97 = arith.constant 9.99999997E-7 : f32
    %235 = vector.broadcast %cst_97 : f32 to vector<8x1xf32>
    %236 = arith.addf %232, %235 : vector<8x1xf32>
    %237 = math.rsqrt %236 : vector<8x1xf32>
    %238 = vector.broadcast %237 : vector<8x1xf32> to vector<8x32xf32>
    %239 = arith.mulf %234, %238 : vector<8x32xf32>
    %240 = vector.broadcast %3 : vector<1x32xf32> to vector<8x32xf32>
    %241 = arith.mulf %239, %240 : vector<8x32xf32>
    %242 = vector.broadcast %4 : vector<1x32xf32> to vector<8x32xf32>
    %243 = arith.addf %241, %242 : vector<8x32xf32>
    %c1 = arith.constant 1 : index
    %c0_98 = arith.constant 0 : index
    %c0_99 = arith.constant 0 : index
    %244 = vector.load %arg6[%c1, %c0_98, %c0_99] : memref<2x32x64xf32, #tpu.memory_space<vmem>>, vector<1x32x64xf32>
    %245 = vector.shape_cast %244 : vector<1x32x64xf32> to vector<32x64xf32>
    %cst_100 = arith.constant dense<0.000000e+00> : vector<8x64xf32>
    %246 = tpu.matmul %243, %245, %cst_100 {dimension_numbers = #tpu.dot_dimension_numbers<[1], [0], [0], [1], [0, 0, 1, 1], [], []>} : vector<8x32xf32>, vector<32x64xf32>, vector<8x64xf32> -> vector<8x64xf32>
    %c1_101 = arith.constant 1 : index
    %c0_102 = arith.constant 0 : index
    %c0_103 = arith.constant 0 : index
    %247 = vector.load %arg7[%c1_101, %c0_102, %c0_103] : memref<2x1x64xf32, #tpu.memory_space<vmem>>, vector<1x1x64xf32>
    %248 = vector.shape_cast %247 : vector<1x1x64xf32> to vector<1x64xf32>
    %249 = vector.broadcast %248 : vector<1x64xf32> to vector<8x64xf32>
    %250 = arith.addf %246, %249 : vector<8x64xf32>
    %cst_104 = arith.constant 0.000000e+00 : f32
    %251 = vector.broadcast %cst_104 : f32 to vector<8x64xf32>
    %252 = arith.maximumf %250, %251 : vector<8x64xf32>
    %c1_105 = arith.constant 1 : index
    %c0_106 = arith.constant 0 : index
    %c0_107 = arith.constant 0 : index
    %253 = vector.load %arg8[%c1_105, %c0_106, %c0_107] : memref<2x64x32xf32, #tpu.memory_space<vmem>>, vector<1x64x32xf32>
    %254 = vector.shape_cast %253 : vector<1x64x32xf32> to vector<64x32xf32>
    %cst_108 = arith.constant dense<0.000000e+00> : vector<8x32xf32>
    %255 = tpu.matmul %252, %254, %cst_108 {dimension_numbers = #tpu.dot_dimension_numbers<[1], [0], [0], [1], [0, 0, 1, 1], [], []>} : vector<8x64xf32>, vector<64x32xf32>, vector<8x32xf32> -> vector<8x32xf32>
    %c1_109 = arith.constant 1 : index
    %c0_110 = arith.constant 0 : index
    %c0_111 = arith.constant 0 : index
    %256 = vector.load %arg9[%c1_109, %c0_110, %c0_111] : memref<2x1x32xf32, #tpu.memory_space<vmem>>, vector<1x1x32xf32>
    %257 = vector.shape_cast %256 : vector<1x1x32xf32> to vector<1x32xf32>
    %258 = vector.broadcast %257 : vector<1x32xf32> to vector<8x32xf32>
    %259 = arith.addf %255, %258 : vector<8x32xf32>
    %260 = arith.addf %259, %243 : vector<8x32xf32>
    %c1_112 = arith.constant 1 : index
    %c0_113 = arith.constant 0 : index
    %c0_114 = arith.constant 0 : index
    %261 = vector.load %arg10[%c1_112, %c0_113, %c0_114] : memref<2x1x32xf32, #tpu.memory_space<vmem>>, vector<1x1x32xf32>
    %262 = vector.shape_cast %261 : vector<1x1x32xf32> to vector<1x32xf32>
    %c1_115 = arith.constant 1 : index
    %c0_116 = arith.constant 0 : index
    %c0_117 = arith.constant 0 : index
    %263 = vector.load %arg11[%c1_115, %c0_116, %c0_117] : memref<2x1x32xf32, #tpu.memory_space<vmem>>, vector<1x1x32xf32>
    %264 = vector.shape_cast %263 : vector<1x1x32xf32> to vector<1x32xf32>
    %cst_118 = arith.constant dense<0.000000e+00> : vector<8xf32>
    %265 = vector.multi_reduction <add>, %260, %cst_118 [1] : vector<8x32xf32> to vector<8xf32>
    %266 = vector.shape_cast %265 : vector<8xf32> to vector<8x1xf32>
    %cst_119 = arith.constant 3.200000e+01 : f32
    %267 = vector.broadcast %cst_119 : f32 to vector<8x1xf32>
    %268 = arith.divf %266, %267 : vector<8x1xf32>
    %269 = vector.broadcast %268 : vector<8x1xf32> to vector<8x32xf32>
    %270 = arith.subf %260, %269 : vector<8x32xf32>
    %271 = arith.mulf %270, %270 : vector<8x32xf32>
    %cst_120 = arith.constant dense<0.000000e+00> : vector<8xf32>
    %272 = vector.multi_reduction <add>, %271, %cst_120 [1] : vector<8x32xf32> to vector<8xf32>
    %273 = vector.shape_cast %272 : vector<8xf32> to vector<8x1xf32>
    %cst_121 = arith.constant 3.200000e+01 : f32
    %274 = vector.broadcast %cst_121 : f32 to vector<8x1xf32>
    %275 = arith.divf %273, %274 : vector<8x1xf32>
    %276 = vector.broadcast %268 : vector<8x1xf32> to vector<8x32xf32>
    %277 = arith.subf %260, %276 : vector<8x32xf32>
    %cst_122 = arith.constant 9.99999997E-7 : f32
    %278 = vector.broadcast %cst_122 : f32 to vector<8x1xf32>
    %279 = arith.addf %275, %278 : vector<8x1xf32>
    %280 = math.rsqrt %279 : vector<8x1xf32>
    %281 = vector.broadcast %280 : vector<8x1xf32> to vector<8x32xf32>
    %282 = arith.mulf %277, %281 : vector<8x32xf32>
    %283 = vector.broadcast %262 : vector<1x32xf32> to vector<8x32xf32>
    %284 = arith.mulf %282, %283 : vector<8x32xf32>
    %285 = vector.broadcast %264 : vector<1x32xf32> to vector<8x32xf32>
    %286 = arith.addf %284, %285 : vector<8x32xf32>
    %c0_123 = arith.constant 0 : index
    %c0_124 = arith.constant 0 : index
    %c0_125 = arith.constant 0 : index
    %287 = vector.load %arg12[%c0_123, %c0_124, %c0_125] : memref<1x8x32xf32, #tpu.memory_space<vmem>>, vector<1x8x32xf32>
    %288 = vector.shape_cast %287 : vector<1x8x32xf32> to vector<8x32xf32>
    %289 = vector.shape_cast %286 : vector<8x32xf32> to vector<1x8x32xf32>
    tpu.vector_store %arg12[%c0_123, %c0_124, %c0_125], %289 {strides = array<i32>} : memref<1x8x32xf32, #tpu.memory_space<vmem>>, vector<1x8x32xf32>,
    return
  }
  func.func @transform_0(%arg0: i32) -> (i32, i32, i32) {
    %c0_i32 = arith.constant 0 : i32
    %c0_i32_0 = arith.constant 0 : i32
    %c0_i32_1 = arith.constant 0 : i32
    return %arg0, %c0_i32, %c0_i32_0 : i32, i32, i32
  }
  func.func @transform_1(%arg0: i32) -> (i32, i32) {
    %c0_i32 = arith.constant 0 : i32
    %c0_i32_0 = arith.constant 0 : i32
    %c0_i32_1 = arith.constant 0 : i32
    return %c0_i32, %c0_i32_0 : i32, i32
  }
  func.func @transform_2(%arg0: i32) -> (i32, i32) {
    %c0_i32 = arith.constant 0 : i32
    %c0_i32_0 = arith.constant 0 : i32
    %c0_i32_1 = arith.constant 0 : i32
    return %c0_i32, %c0_i32_0 : i32, i32
  }
  func.func @transform_3(%arg0: i32) -> (i32, i32) {
    %c0_i32 = arith.constant 0 : i32
    %c0_i32_0 = arith.constant 0 : i32
    %c0_i32_1 = arith.constant 0 : i32
    return %c0_i32, %c0_i32_0 : i32, i32
  }
  func.func @transform_4(%arg0: i32) -> (i32, i32) {
    %c0_i32 = arith.constant 0 : i32
    %c0_i32_0 = arith.constant 0 : i32
    %c0_i32_1 = arith.constant 0 : i32
    return %c0_i32, %c0_i32_0 : i32, i32
  }
  func.func @transform_5(%arg0: i32) -> (i32, i32, i32) {
    %c0_i32 = arith.constant 0 : i32
    %c0_i32_0 = arith.constant 0 : i32
    %c0_i32_1 = arith.constant 0 : i32
    %c0_i32_2 = arith.constant 0 : i32
    return %c0_i32, %c0_i32_0, %c0_i32_1 : i32, i32, i32
  }
  func.func @transform_6(%arg0: i32) -> (i32, i32, i32) {
    %c0_i32 = arith.constant 0 : i32
    %c0_i32_0 = arith.constant 0 : i32
    %c0_i32_1 = arith.constant 0 : i32
    %c0_i32_2 = arith.constant 0 : i32
    return %c0_i32, %c0_i32_0, %c0_i32_1 : i32, i32, i32
  }
  func.func @transform_7(%arg0: i32) -> (i32, i32, i32) {
    %c0_i32 = arith.constant 0 : i32
    %c0_i32_0 = arith.constant 0 : i32
    %c0_i32_1 = arith.constant 0 : i32
    %c0_i32_2 = arith.constant 0 : i32
    return %c0_i32, %c0_i32_0, %c0_i32_1 : i32, i32, i32
  }
  func.func @transform_8(%arg0: i32) -> (i32, i32, i32) {
    %c0_i32 = arith.constant 0 : i32
    %c0_i32_0 = arith.constant 0 : i32
    %c0_i32_1 = arith.constant 0 : i32
    %c0_i32_2 = arith.constant 0 : i32
    return %c0_i32, %c0_i32_0, %c0_i32_1 : i32, i32, i32
  }
  func.func @transform_9(%arg0: i32) -> (i32, i32, i32) {
    %c0_i32 = arith.constant 0 : i32
    %c0_i32_0 = arith.constant 0 : i32
    %c0_i32_1 = arith.constant 0 : i32
    %c0_i32_2 = arith.constant 0 : i32
    return %c0_i32, %c0_i32_0, %c0_i32_1 : i32, i32, i32
  }
  func.func @transform_10(%arg0: i32) -> (i32, i32, i32) {
    %c0_i32 = arith.constant 0 : i32
    %c0_i32_0 = arith.constant 0 : i32
    %c0_i32_1 = arith.constant 0 : i32
    %c0_i32_2 = arith.constant 0 : i32
    return %c0_i32, %c0_i32_0, %c0_i32_1 : i32, i32, i32
  }
  func.func @transform_11(%arg0: i32) -> (i32, i32, i32) {
    %c0_i32 = arith.constant 0 : i32
    %c0_i32_0 = arith.constant 0 : i32
    %c0_i32_1 = arith.constant 0 : i32
    return %arg0, %c0_i32, %c0_i32_0 : i32, i32, i32
  }
}

</mosaic_0001>

<bundles_post_ra>
// kernel: tpu_custom_call.1
= control target key start
LH: loop header
LB: loop body
LE: loop exit
PB: predicated region body
PF: predicated region fallthrough
CT: control target
= control target key end

     0   :  { %s4059_s0 = inlined_call_operand.vmem [shape: f32[2,8,32], index: 0, kind: input, shape index: {}]   ;;  %s4060_s1 = inlined_call_operand.vmem [shape: f32[32,96], index: 1, kind: input, shape index: {}]   ;;  %s4061_s2 = inlined_call_operand.vmem [shape: f32[32,32], index: 2, kind: input, shape index: {}]   ;;  %s4062_s3 = inlined_call_operand.vmem [shape: f32[1,32], index: 3, kind: input, shape index: {}]   ;;  %s4063_s4 = inlined_call_operand.vmem [shape: f32[1,32], index: 4, kind: input, shape index: {}]   ;;  %s4064_s5 = inlined_call_operand.vmem [shape: f32[2,32,64], index: 5, kind: input, shape index: {}]   ;;  %s4065_s6 = inlined_call_operand.vmem [shape: f32[2,1,64], index: 6, kind: input, shape index: {}]   ;;  %s4066_s7 = inlined_call_operand.vmem [shape: f32[2,64,32], index: 7, kind: input, shape index: {}]   ;;  %s4067_s8 = inlined_call_operand.vmem [shape: f32[2,1,32], index: 8, kind: input, shape index: {}]   ;;  %s4068_s9 = inlined_call_operand.vmem [shape: f32[2,1,32], index: 9, kind: input, shape index: {}]   ;;  %s4069_s10 = inlined_call_operand.vmem [shape: f32[2,1,32], index: 10, kind: input, shape index: {}]   ;;  %s4070_s11 = inlined_call_operand.hbm [shape: f32[2,8,32], index: 11, kind: output, shape index: {}]  }
   0x1   :  { %4080 = sst [smem:[#allocation5_spill]] %s4059_s0 }
   0x2   :  { %4081 = sst [smem:[#allocation6_spill]] %s4060_s1 }
   0x3   :  { %4082 = sst [smem:[#allocation7_spill]] %s4061_s2 }
   0x4   :  { %16 = vsyncpa [#allocation3], 0 }
   0x5   :  { %18 = vsyncpa [#allocation3 + $0x1], 0  ;;  %s3569_s17 = smov 0   ;;  %s3571_s18 = smov 0  }
   0x6   :  { %s3573_s19 = smov 0   ;;  %s3575_s20 = smov 0  }
   0x7 LB: > { %s3590_s21 = sadd.s32 4294967295, %s3493_s20   ;;  %s2979_s22 = sadd.s32 4294967294, %s3493_s20   ;;  %s3493_s20 = sphi %s3575_s20, %s4100_s20   ;;  %s3489_s19 = sphi %s3573_s19, %s4099_s19   ;;  %s3485_s18 = sphi %s3571_s18, %s4098_s18   ;;  %s3481_s17 = sphi %s3569_s17, %s4097_s17  }
   0x8   : > { %s3594_s23 = sadd.s32 1, %s3493_s20   ;;  %s267_s24 = sadd.s32 1, %s3489_s19 }
   0x9   : > { %s264_s25 = ssub.s32 %s3493_s20, %s3594_s23  ;;  %p277_p0 = scmp.ne.s32.totalorder %s3489_s19, %s3485_s18 }
   0xa   : > { %p265_p1 = scmp.eq.s32.totalorder %s264_s25, 0  ;;  %p278_p2 = scmp.eq.s32.totalorder %s3590_s21, 1 }
   0xb   : > { %p283_p3 = scmp.ne.s32.totalorder %s3485_s18, %s3481_s17  ;;  %p284_p4 = scmp.eq.s32.totalorder %s2979_s22, 1 }
   0xc   : > { %s3605_s26 = scalar_select %p265_p1, %s3489_s19, %s267_s24  }
   0xd   : > { %p3607_p5 = por %p278_p2, %p277_p0  ;;  %p3611_p6 = por %p284_p4, %p283_p3 }
   0xe   : > { %p2982_p7 = scmp.ge.s32.totalorder %s3493_s20, 1  ;;  %p339_p8 = scmp.lt.s32.totalorder %s3493_s20, 3 }
  0x10   : > { %p340_p9 = pnand %p2982_p7, %p339_p8 }
  0x11   : > { %s4085_s1 = sld [smem:[#allocation6_spill]] (!%p340_p9)  ;;  %p378_p10 = scmp.lt.s32.totalorder (!%p340_p9), %s3590_s21, 1 }
  0x12   : > { %343 = sbr.rel (%p340_p9) target bundleno = 6907 (0x1afb), region = 64  ;;  %s4086_s0 = sld [smem:[#allocation5_spill]] (!%p340_p9) }
  0x13   : > { %s4079_s13 = smov (!%p340_p9), 120   ;;  %s3499_s15 = smov (!%p340_p9), 88  }
  0x14   : > { %s4078_s16 = smov (!%p340_p9), 56   ;;  %s4071_s24 = smov (!%p340_p9), 80  }
  0x15   : > { %s4077_s25 = smov (!%p340_p9), 112   ;;  %s4087_s2 = sld [smem:[#allocation7_spill]] (!%p340_p9) }
  0x16   : > { %s4073_s29 = smov (!%p340_p9), 104   ;;  %s4075_s30 = smov (!%p340_p9), 48  }
  0x17   : > { %v3620_v0 = vld [vmem:[%s4085_s1 + $0x18] sm:$0xff]  ;;  %v3495_v1 = vmov 0.0   ;;  %v3627_v2 = vld [vmem:[%s4085_s1 + $0x10] sm:$0xff]  ;;  %vm3496_vm0 = vmmov 0   ;;  %s379_s14 = scalar_select %p378_p10, %s3590_s21, 1  ;;  %v3638_v3 = vld [vmem:[%s4085_s1 + $0x8] sm:$0xff] }
  0x18   : > { %3139 = vmatprep.subr.mxu0 %v3495_v1  ;;  %3147 = vmatprep.mubr.msk.f32.mxu0 %vm3496_vm0, %v3495_v1  ;;  %v3647_v4 = vld [vmem:[%s4085_s1] sm:$0xff]  ;;  %vm389_vm1 = vcmask 261120   ;;  %vm466_vm2 = vcmask 64512   ;;  %vm1550_vm3 = vcmask 523264  }
  0x19   : > { %3140 = vmatpush3.msra.mxu0 %v3620_v0  ;;  %3155 = vmatprep.subr.mxu1 %v3495_v1  ;;  %s2984_s22 = sshll.u32 %s379_s14, 3  ;;  %s3498_s14 = smov 96  }
  0x1a   : > { %3141 = vmatprep.subr.mxu0 %v3495_v1  ;;  %3157 = vmatprep.mubr.msk.f32.mxu1 %vm3496_vm0, %v3495_v1  ;;  %s381_s12 = scalar_lea.vmem %s4086_s0, %s2984_s22  ;;  %s4076_s22 = smov 64  }
  0x1b   : > { %3142 = vmatpush3.msra.mxu0 %v3627_v2  ;;  %v3653_v5 = vld [vmem:[%s381_s12] sm:$0xff]  ;;  %v3710_v36 = vld [vmem:[%s4087_s2 + $0x8] sm:$0xff]  ;;  %v3746_v62 = vld [vmem:[%s4087_s2 + $0x10] sm:$0xff] }
  0x1c   : > { %3143 = vmatprep.subr.mxu0 %v3495_v1  ;;  %v3704_v35 = vld [vmem:[%s4087_s2] sm:$0xff] }
  0x1d   : > { %3144 = vmatpush3.msra.mxu0 %v3638_v3 }
  0x1e   : > { %3145 = vmatprep.subr.mxu0 %v3495_v1 }
  0x1f   : > { %3146 = vmatpush3.msra.mxu0 %v3647_v4 }
  0x20   : > { %3148 = vmatmul.mubr.msk.f32.vlgmr.msra.gmra.mxu0 %vm389_vm1, %v3653_v5  ;;  %3150 = vmatprep.subr.mxu0 %v3495_v1 }
  0x21   : > { %3152 = vmatprep.mubr.msk.f32.mxu0 %vm3496_vm0, %v3495_v1 }
  0xe0   : > { %v3662_v6 = vpop.f32.mrf.mxu0 }
  0xe1   : > { %629 = vrot.lane.b32.xlu1 %v3662_v6, %s4079_s13  ;;  %464 = vrot.lane.b32.xlu0 %v3662_v6, %s3498_s14  ;;  %s4091_s13 = smov 64  }
  0xe2   : > { %v3149_v7 = vpop.f32.mrf.mxu0 }
  0xe5   : > { %631 = vrot.lane.b32.xlu0 %v3662_v6, %s3499_s15 }
 0x153   : > { %v465_v8 = vpop.permute.xlu0 %464  ;;  %v630_v10 = vpop.permute.xlu1 %629 }
 0x154   : > { %3151 = vmatpush3.xpose.msk.msra.mxu0 %vm466_vm2, %v465_v8 }
 0x155   : > { %3160 = vmatprep.subr.mxu0 %v3495_v1 }
 0x157   : > { %3153 = vmatmul.mubr.msk.f32.vlgmr.msra.gmra.mxu0 %vm466_vm2, %v3662_v6  ;;  %v632_v9 = vpop.permute.xlu0 %631 }
 0x158   : > { %3161 = vmatpush3.xpose.msk.msra.mxu0 %vm466_vm2, %v632_v9  ;;  %3162 = vmatprep.mubr.msk.f32.mxu0 %vm3496_vm0, %v3495_v1 }
 0x159   : > { %3170 = vmatprep.subr.mxu0 %v3495_v1 }
 0x15b   : > { %3163 = vmatmul.mubr.msk.f32.vlgmr.msra.gmra.mxu0 %vm466_vm2, %v630_v10 }
 0x15c   : > { %3172 = vmatprep.mubr.msk.f32.mxu0 %vm3496_vm0, %v3495_v1  ;;  %3171 = vmatpush3.msra.mxu0 %v3710_v36 }
 0x15d   : > { %3180 = vmatprep.subr.mxu0 %v3495_v1 }
 0x217   : > { %v537_v11 = vpop.f32.mrf.mxu0 }
 0x218   : > { %v541_v12 = vsel %vm466_vm2, %v537_v11, -inf }
 0x219   : > { %542 = vmax.xlane.f32.xlu1 %v541_v12  ;;  %v3154_v13 = vpop.f32.mrf.mxu0 }
 0x21b   : > { %v703_v14 = vpop.f32.mrf.mxu0 }
 0x21c   : > { %v707_v15 = vsel %vm466_vm2, %v703_v14, -inf }
 0x21d   : > { %708 = vmax.xlane.f32.xlu0 %v707_v15  ;;  %v3164_v16 = vpop.f32.mrf.mxu0 }
 0x2a2   : > { %v543_v17 = vpop.xlane.xlu1 %542 }
 0x2a3   : > { %v544_v18 = vsub.f32 %v537_v11, %v543_v17  ;;  %v3761_v17 = vld [vmem:[%s4087_s2 + $0x18] sm:$0xff] }
 0x2a5   : > { %v545_v19 = vmul.f32 1.442695, %v544_v18 }
 0x2a6   : > { %v709_v20 = vpop.xlane.xlu0 %708 }
 0x2a7   : > { %3393 = vpow2.f32 %v545_v19  ;;  %v710_v21 = vsub.f32 %v703_v14, %v709_v20 }
 0x2a9   : > { %v711_v22 = vmul.f32 1.442695, %v710_v21 }
 0x2ab   : > { %3395 = vpow2.f32 %v711_v22 }
 0x2b4   : > { %v3394_v23 = vpop.eup %3393 }
 0x2b5   : > { %v547_v24 = vsel %vm466_vm2, %v3394_v23, 0.0 }
 0x2b6   : > { %548 = vadd.xlane.f32.xlu0 %v547_v24 }
 0x2b8   : > { %v3396_v25 = vpop.eup %3395 }
 0x2b9   : > { %v713_v26 = vsel %vm466_vm2, %v3396_v25, 0.0 }
 0x2ba   : > { %714 = vadd.xlane.f32.xlu1 %v713_v26 }
 0x2cb   : > { %718 = vrot.lane.b32.xlu1 %v3662_v6, %s4078_s16  ;;  %s4092_s16 = smov 80  }
 0x2cc   : > { %552 = vrot.lane.b32.xlu0 %v3662_v6, %s4076_s22  ;;  %s4088_s22 = smov 120  }
 0x2cf   : > { %943 = vrot.lane.b32.xlu1 %v3662_v6, %s4071_s24  ;;  %s4072_s24 = smov 72  }
 0x2d0   : > { %941 = vrot.lane.b32.xlu0 %v3662_v6, %s4077_s25  ;;  %s4093_s25 = smov 48  }
 0x33f   : > { %v549_v27 = vpop.xlane.xlu0 %548 }
 0x340   : > { %3397 = vrcp.f32 %v549_v27 }
 0x343   : > { %v715_v28 = vpop.xlane.xlu1 %714  ;;  %v553_v29 = vpop.permute.xlu0 %552 }
 0x344   : > { %3399 = vrcp.f32 %v715_v28  ;;  %3156 = vmatpush3.msra.mxu1 %v553_v29 }
 0x345   : > { %3165 = vmatprep.subr.mxu1 %v3495_v1 }
 0x347   : > { %v719_v32 = vpop.permute.xlu1 %718  ;;  %v942_v42 = vpop.permute.xlu0 %941 }
 0x34b   : > { %v944_v40 = vpop.permute.xlu1 %943 }
 0x34d   : > { %v3398_v30 = vpop.eup %3397 }
 0x34e   : > { %v551_v31 = vmul.f32 %v3398_v30, %v3394_v23 }
 0x350   : > { %3158 = vmatmul.mubr.msk.f32.vlgmr.msra.gmra.mxu1 %vm466_vm2, %v551_v31 }
 0x351   : > { %v3400_v33 = vpop.eup %3399  ;;  %3166 = vmatpush3.msra.mxu1 %v719_v32  ;;  %3167 = vmatprep.mubr.msk.f32.mxu1 %vm3496_vm0, %v3495_v1 }
 0x352   : > { %v717_v34 = vmul.f32 %v3400_v33, %v3396_v25  ;;  %3175 = vmatprep.subr.mxu1 %v3495_v1 }
 0x354   : > { %3168 = vmatmul.mubr.msk.f32.vlgmr.msra.gmra.mxu1 %vm466_vm2, %v717_v34 }
 0x355   : > { %3177 = vmatprep.mubr.msk.f32.mxu1 %vm3496_vm0, %v3495_v1  ;;  %3176 = vmatpush3.msra.mxu1 %v3704_v35 }
 0x356   : > { %3185 = vmatprep.subr.mxu1 %v3495_v1 }
 0x410   : > { %v624_v37 = vpop.f32.mrf.mxu1 }
 0x411   : > { %3178 = vmatmul.mubr.msk.f32.vlgmr.msra.gmra.mxu1 %vm466_vm2, %v624_v37  ;;  %v1453_v37 = vld [vmem:[%s4064_s5 + $0x18] sm:$0xff] }
 0x412   : > { %v3159_v38 = vpop.f32.mrf.mxu1  ;;  %3187 = vmatprep.mubr.msk.f32.mxu1 %vm3496_vm0, %v3495_v1 }
 0x413   : > { %v1452_v38 = vld [vmem:[%s4064_s5 + $0x10] sm:$0xff] }
 0x414   : > { %v790_v39 = vpop.f32.mrf.mxu1 }
 0x415   : > { %3173 = vmatmul.mubr.msk.f32.vlgmr.msra.gmra.mxu0 %vm466_vm2, %v790_v39  ;;  %v1450_v39 = vld [vmem:[%s4064_s5] sm:$0xff] }
 0x416   : > { %3181 = vmatpush3.xpose.msk.msra.mxu0 %vm466_vm2, %v944_v40  ;;  %v3169_v41 = vpop.f32.mrf.mxu1  ;;  %3182 = vmatprep.mubr.msk.f32.mxu0 %vm3496_vm0, %v3495_v1  ;;  %v1542_v40 = vld [vmem:[%s4066_s7 + $0x38] sm:$0xff] }
 0x417   : > { %3190 = vmatprep.subr.mxu0 %v3495_v1  ;;  %v1541_v41 = vld [vmem:[%s4066_s7 + $0x30] sm:$0xff] }
 0x419   : > { %3183 = vmatmul.mubr.msk.f32.vlgmr.msra.gmra.mxu0 %vm466_vm2, %v942_v42  ;;  %v1540_v42 = vld [vmem:[%s4066_s7 + $0x28] sm:$0xff] }
 0x41a   : > { %3192 = vmatprep.mubr.msk.f32.mxu0 %vm3496_vm0, %v3495_v1  ;;  %3191 = vmatpush3.msra.mxu0 %v3746_v62 }
 0x41b   : > { %3200 = vmatprep.subr.mxu0 %v3495_v1 }
 0x4d1   : > { %v937_v43 = vpop.f32.mrf.mxu1 }
 0x4d3   : > { %v3179_v44 = vpop.f32.mrf.mxu1 }
 0x4d4   : > { %v1538_v44 = vld [vmem:[%s4066_s7 + $0x18] sm:$0xff] }
 0x4d5   : > { %v864_v45 = vpop.f32.mrf.mxu0 }
 0x4d6   : > { %v938_v46 = vadd.f32 %v937_v43, %v864_v45  ;;  %v1539_v43 = vld [vmem:[%s4066_s7 + $0x20] sm:$0xff] }
 0x4d7   : > { %v3174_v47 = vpop.f32.mrf.mxu0 }
 0x4d9   : > { %v1015_v48 = vpop.f32.mrf.mxu0 }
 0x4da   : > { %v1019_v49 = vsel %vm466_vm2, %v1015_v48, -inf }
 0x4db   : > { %1020 = vmax.xlane.f32.xlu1 %v1019_v49  ;;  %v3184_v50 = vpop.f32.mrf.mxu0  ;;  %v3813_v49 = vld [vmem:[%s4062_s3] ss:$0 sm:$0xff] }
 0x4ec   : > { %1183 = vrot.lane.b32.xlu1 %v3662_v6, %s4072_s24  ;;  %s4094_s24 = smov 104  }
 0x4f0   : > { %1181 = vrot.lane.b32.xlu1 %v3662_v6, %s4073_s29  ;;  %s4074_s29 = smov 40  }
 0x564   : > { %v1021_v51 = vpop.xlane.xlu1 %1020 }
 0x565   : > { %v1022_v52 = vsub.f32 %v1015_v48, %v1021_v51  ;;  %v3818_v51 = vld [vmem:[%s4063_s4] ss:$0 sm:$0xff] }
 0x567   : > { %v1023_v53 = vmul.f32 1.442695, %v1022_v52 }
 0x568   : > { %v1184_v59 = vpop.permute.xlu1 %1183 }
 0x569   : > { %3401 = vpow2.f32 %v1023_v53 }
 0x56c   : > { %v1182_v61 = vpop.permute.xlu1 %1181 }
 0x576   : > { %v3402_v54 = vpop.eup %3401 }
 0x577   : > { %v1025_v55 = vsel %vm466_vm2, %v3402_v54, 0.0 }
 0x578   : > { %1026 = vadd.xlane.f32.xlu0 %v1025_v55 }
 0x58e   : > { %1030 = vrot.lane.b32.xlu0 %v3662_v6, %s4075_s30  ;;  %s4096_s30 = smov 40  }
 0x601   : > { %v1027_v56 = vpop.xlane.xlu0 %1026 }
 0x602   : > { %3403 = vrcp.f32 %v1027_v56 }
 0x605   : > { %v1031_v57 = vpop.permute.xlu0 %1030 }
 0x606   : > { %3186 = vmatpush3.msra.mxu1 %v1031_v57 }
 0x607   : > { %3195 = vmatprep.subr.mxu1 %v3495_v1 }
 0x60f   : > { %v3404_v58 = vpop.eup %3403 }
 0x610   : > { %v1029_v60 = vmul.f32 %v3404_v58, %v3402_v54  ;;  %v3006_v58 = vld [vmem:[%s4067_s8] ss:$0 sm:$0xff] }
 0x612   : > { %3188 = vmatmul.mubr.msk.f32.vlgmr.msra.gmra.mxu1 %vm466_vm2, %v1029_v60 }
 0x613   : > { %3196 = vmatpush3.xpose.msk.msra.mxu1 %vm466_vm2, %v1184_v59  ;;  %3197 = vmatprep.mubr.msk.f32.mxu1 %vm3496_vm0, %v3495_v1 }
 0x614   : > { %3205 = vmatprep.subr.mxu1 %v3495_v1 }
 0x616   : > { %3198 = vmatmul.mubr.msk.f32.vlgmr.msra.gmra.mxu1 %vm466_vm2, %v1182_v61 }
 0x617   : > { %3207 = vmatprep.mubr.msk.f32.mxu1 %vm3496_vm0, %v3495_v1  ;;  %3206 = vmatpush3.msra.mxu1 %v3761_v17 }
 0x618   : > { %3221 = vmatprep.subr.mxu1 %v3495_v1 }
 0x6d2   : > { %v1102_v63 = vpop.f32.mrf.mxu1 }
 0x6d3   : > { %3193 = vmatmul.mubr.msk.f32.vlgmr.msra.gmra.mxu0 %vm466_vm2, %v1102_v63 }
 0x6d4   : > { %v3189_v7 = vpop.f32.mrf.mxu1  ;;  %3202 = vmatprep.mubr.msk.f32.mxu0 %vm3496_vm0, %v3495_v1 }
 0x6d6   : > { %v1255_v8 = vpop.f32.mrf.mxu1 }
 0x6d7   : > { %v1259_v9 = vsel %vm466_vm2, %v1255_v8, -inf }
 0x6d8   : > { %1260 = vmax.xlane.f32.xlu0 %v1259_v9  ;;  %v3199_v10 = vpop.f32.mrf.mxu1 }
 0x6ee   : > { %1270 = vrot.lane.b32.xlu0 %v3662_v6, %s4074_s29  ;;  %s4095_s29 = smov 72  }
 0x761   : > { %v1261_v11 = vpop.xlane.xlu0 %1260 }
 0x762   : > { %v1262_v12 = vsub.f32 %v1255_v8, %v1261_v11 }
 0x764   : > { %v1263_v13 = vmul.f32 1.442695, %v1262_v12 }
 0x765   : > { %v1271_v14 = vpop.permute.xlu0 %1270 }
 0x766   : > { %3405 = vpow2.f32 %v1263_v13  ;;  %3201 = vmatpush3.msra.mxu0 %v1271_v14 }
 0x767   : > { %3210 = vmatprep.subr.mxu0 %v3495_v1 }
 0x773   : > { %v3406_v15 = vpop.eup %3405 }
 0x774   : > { %v1265_v16 = vsel %vm466_vm2, %v3406_v15, 0.0 }
 0x775   : > { %1266 = vadd.xlane.f32.xlu1 %v1265_v16 }
 0x793   : > { %v1176_v6 = vpop.f32.mrf.mxu0 }
 0x794   : > { %v1180_v18 = vadd.f32 %v1176_v6, %v938_v46  ;;  %v3008_v6 = vld [vmem:[%s4068_s9] ss:$0 sm:$0xff] }
 0x795   : > { %v3194_v19 = vpop.f32.mrf.mxu0 }
 0x796   : > { %v3009_v19 = vld [vmem:[%s4069_s10] ss:$0 sm:$0xff] }
 0x7fe   : > { %v1267_v20 = vpop.xlane.xlu1 %1266 }
 0x7ff   : > { %3407 = vrcp.f32 %v1267_v20 }
 0x80c   : > { %v3408_v21 = vpop.eup %3407 }
 0x80d   : > { %v1269_v22 = vmul.f32 %v3408_v21, %v3406_v15 }
 0x80f   : > { %3203 = vmatmul.mubr.msk.f32.vlgmr.msra.gmra.mxu0 %vm466_vm2, %v1269_v22 }
 0x810   : > { %3218 = vmatprep.mubr.msk.f32.mxu0 %vm3496_vm0, %v3495_v1  ;;  %3211 = vmatpush3.msra.mxu0 %v1453_v37 }
 0x811   : > { %3212 = vmatprep.subr.mxu0 %v3495_v1 }
 0x812   : > { %3213 = vmatpush3.msra.mxu0 %v1452_v38 }
 0x813   : > { %3214 = vmatprep.subr.mxu0 %v3495_v1 }
 0x8cf   : > { %v1342_v23 = vpop.f32.mrf.mxu0 }
 0x8d0   : > { %3208 = vmatmul.mubr.msk.f32.vlgmr.msra.gmra.mxu1 %vm466_vm2, %v1342_v23 }
 0x8d1   : > { %v3204_v24 = vpop.f32.mrf.mxu0  ;;  %3237 = vmatprep.mubr.msk.f32.mxu1 %vm3496_vm0, %v3495_v1  ;;  %3222 = vmatpush3.msra.mxu1 %v1542_v40 }
 0x8d2   : > { %3223 = vmatprep.subr.mxu1 %v3495_v1 }
 0x8d3   : > { %3224 = vmatpush3.msra.mxu1 %v1541_v41 }
 0x8d4   : > { %3225 = vmatprep.subr.mxu1 %v3495_v1 }
 0x8d5   : > { %3226 = vmatpush3.msra.mxu1 %v1540_v42 }
 0x8d6   : > { %3227 = vmatprep.subr.mxu1 %v3495_v1 }
 0x8d7   : > { %3228 = vmatpush3.msra.mxu1 %v1539_v43 }
 0x8d8   : > { %3229 = vmatprep.subr.mxu1 %v3495_v1 }
 0x8d9   : > { %3230 = vmatpush3.msra.mxu1 %v1538_v44 }
 0x8da   : > { %3231 = vmatprep.subr.mxu1 %v3495_v1 }
 0x990   : > { %v1416_v25 = vpop.f32.mrf.mxu1 }
 0x991   : > { %v1420_v26 = vadd.f32 %v1416_v25, %v1180_v18 }
 0x992   : > { %v3209_v27 = vpop.f32.mrf.mxu1 }
 0x993   : > { %v1421_v28 = vadd.f32 %v1420_v26, %v3653_v5  ;;  %v1451_v5 = vld [vmem:[%s4064_s5 + $0x8] sm:$0xff] }
 0x994   : > { %3215 = vmatpush3.msra.mxu0 %v1451_v5 }
 0x995   : > { %v1422_v29 = vsel %vm389_vm1, %v1421_v28, 0.0  ;;  %3216 = vmatprep.subr.mxu0 %v3495_v1 }
 0x996   : > { %1423 = vadd.xlane.f32.xlu1 %v1422_v29  ;;  %3217 = vmatpush3.msra.mxu0 %v1450_v39 }
 0x997   : > { %3240 = vmatprep.subr.mxu0 %v3495_v1 }
 0xa1f   : > { %v1424_v30 = vpop.xlane.xlu1 %1423 }
 0xa20   : > { %v1426_v31 = vmul.f32 0.03125, %v1424_v30 }
 0xa22   : > { %v1427_v32 = vsub.f32 %v1421_v28, %v1426_v31 }
 0xa24   : > { %v1428_v33 = vmul.f32 %v1427_v32, %v1427_v32 }
 0xa26   : > { %v1429_v34 = vsel %vm389_vm1, %v1428_v33, 0.0 }
 0xa27   : > { %1430 = vadd.xlane.f32.xlu1 %v1429_v34 }
 0xab0   : > { %v1431_v45 = vpop.xlane.xlu1 %1430 }
 0xab1   : > { %v1432_v46 = vmul.f32 0.03125, %v1431_v45 }
 0xab3   : > { %v1433_v47 = vadd.f32 1e-06, %v1432_v46 }
 0xab5   : > { %3409 = vrsqrt.f32 %v1433_v47 }
 0xac2   : > { %v3410_v48 = vpop.eup %3409 }
 0xac3   : > { %v1435_v50 = vmul.f32 %v3410_v48, %v1427_v32 }
 0xac5   : > { %v1442_v52 = vmul.f32 %v3813_v49, %v1435_v50 }
 0xac7   : > { %v1449_v53 = vadd.f32 %v3818_v51, %v1442_v52 }
 0xac9   : > { %3219 = vmatmul.mubr.msk.f32.vlgmr.msra.gmra.mxu0 %vm389_vm1, %v1449_v53 }
 0xaca   : > { %3241 = vmatpush3.msra.mxu0 %v3620_v0  ;;  %3248 = vmatprep.mubr.msk.f32.mxu0 %vm3496_vm0, %v3495_v1  ;;  %v1537_v0 = vld [vmem:[%s4066_s7 + $0x10] sm:$0xff] }
 0xacb   : > { %3242 = vmatprep.subr.mxu0 %v3495_v1  ;;  %3232 = vmatpush3.msra.mxu1 %v1537_v0 }
 0xacc   : > { %3243 = vmatpush3.msra.mxu0 %v3627_v2  ;;  %3233 = vmatprep.subr.mxu1 %v3495_v1  ;;  %v1536_v2 = vld [vmem:[%s4066_s7 + $0x8] sm:$0xff] }
 0xacd   : > { %3244 = vmatprep.subr.mxu0 %v3495_v1  ;;  %3234 = vmatpush3.msra.mxu1 %v1536_v2 }
 0xace   : > { %3245 = vmatpush3.msra.mxu0 %v3638_v3  ;;  %v1535_v3 = vld [vmem:[%s4066_s7] sm:$0xff]  ;;  %3235 = vmatprep.subr.mxu1 %v3495_v1 }
 0xacf   : > { %3246 = vmatprep.subr.mxu0 %v3495_v1  ;;  %3236 = vmatpush3.msra.mxu1 %v1535_v3 }
 0xad0   : > { %3247 = vmatpush3.msra.mxu0 %v3647_v4  ;;  %3256 = vmatprep.subr.mxu1 %v3495_v1  ;;  %v3004_v4 = vld [vmem:[%s4065_s6] ss:$0 sm:$0xff] }
 0xad1   : > { %3251 = vmatprep.subr.mxu0 %v3495_v1 }
 0xb89   : > { %v1530_v54 = vpop.f32.mrf.mxu0 }
 0xb8a   : > { %v1531_v55 = vadd.f32 %v3004_v4, %v1530_v54 }
 0xb8b   : > { %v3220_v56 = vpop.f32.mrf.mxu0 }
 0xb8c   : > { %v1534_v57 = vmax.f32 %v1531_v55, 0.0 }
 0xb8e   : > { %3238 = vmatmul.mubr.msk.f32.vlgmr.msra.gmra.mxu1 %vm1550_vm3, %v1534_v57 }
 0xb8f   : > { %3258 = vmatprep.mubr.msk.f32.mxu1 %vm3496_vm0, %v3495_v1 }
 0xc4e   : > { %v1620_v59 = vpop.f32.mrf.mxu1 }
 0xc4f   : > { %v1621_v60 = vadd.f32 %v3006_v58, %v1620_v59 }
 0xc50   : > { %v3239_v61 = vpop.f32.mrf.mxu1 }
 0xc51   : > { %v1624_v63 = vadd.f32 %v1621_v60, %v1449_v53 }
 0xc53   : > { %v1627_v7 = vsel %vm389_vm1, %v1624_v63, 0.0 }
 0xc54   : > { %1628 = vadd.xlane.f32.xlu1 %v1627_v7 }
 0xcdd   : > { %v1629_v8 = vpop.xlane.xlu1 %1628 }
 0xcde   : > { %v1630_v9 = vmul.f32 0.03125, %v1629_v8 }
 0xce0   : > { %v1631_v10 = vsub.f32 %v1624_v63, %v1630_v9 }
 0xce2   : > { %v1632_v11 = vmul.f32 %v1631_v10, %v1631_v10 }
 0xce4   : > { %v1633_v12 = vsel %vm389_vm1, %v1632_v11, 0.0 }
 0xce5   : > { %1634 = vadd.xlane.f32.xlu1 %v1633_v12 }
 0xd6e   : > { %v1635_v13 = vpop.xlane.xlu1 %1634 }
 0xd6f   : > { %v1636_v14 = vmul.f32 0.03125, %v1635_v13 }
 0xd71   : > { %v1637_v15 = vadd.f32 1e-06, %v1636_v14 }
 0xd73   : > { %3411 = vrsqrt.f32 %v1637_v15 }
 0xd80   : > { %v3412_v16 = vpop.eup %3411 }
 0xd81   : > { %v1639_v18 = vmul.f32 %v3412_v16, %v1631_v10 }
 0xd83   : > { %v1646_v20 = vmul.f32 %v3008_v6, %v1639_v18 }
 0xd85   : > { %v3862_v21 = vadd.f32 %v3009_v19, %v1646_v20 }
 0xd87   : > { %3249 = vmatmul.mubr.msk.f32.vlgmr.msra.gmra.mxu0 %vm389_vm1, %v3862_v21 }
 0xd88   : > { %3253 = vmatprep.mubr.msk.f32.mxu0 %vm3496_vm0, %v3495_v1 }
 0xe47   : > { %v3868_v22 = vpop.f32.mrf.mxu0 }
 0xe48   : > { %1893 = vrot.lane.b32.xlu0 %v3868_v22, %s3499_s15  ;;  %1728 = vrot.lane.b32.xlu1 %v3868_v22, %s3498_s14  ;;  %s4089_s14 = smov 56   ;;  %s4090_s15 = smov 112  }
 0xe49   : > { %v3250_v23 = vpop.f32.mrf.mxu0 }
 0xe4c   : > { %1891 = vrot.lane.b32.xlu0 %v3868_v22, %s4088_s22  ;;  %s3508_s22 = smov [#allocation2]  }
 0xeba   : > { %v1729_v24 = vpop.permute.xlu1 %1728  ;;  %v1894_v25 = vpop.permute.xlu0 %1893 }
 0xebb   : > { %3252 = vmatpush3.xpose.msk.msra.mxu0 %vm466_vm2, %v1729_v24 }
 0xebc   : > { %3261 = vmatprep.subr.mxu0 %v3495_v1 }
 0xebe   : > { %3254 = vmatmul.mubr.msk.f32.vlgmr.msra.gmra.mxu0 %vm466_vm2, %v3868_v22  ;;  %v1892_v26 = vpop.permute.xlu0 %1891 }
 0xebf   : > { %3262 = vmatpush3.xpose.msk.msra.mxu0 %vm466_vm2, %v1894_v25  ;;  %3263 = vmatprep.mubr.msk.f32.mxu0 %vm3496_vm0, %v3495_v1 }
 0xec0   : > { %3271 = vmatprep.subr.mxu0 %v3495_v1 }
 0xec2   : > { %3264 = vmatmul.mubr.msk.f32.vlgmr.msra.gmra.mxu0 %vm466_vm2, %v1892_v26 }
 0xec3   : > { %3272 = vmatpush3.msra.mxu0 %v3710_v36  ;;  %3273 = vmatprep.mubr.msk.f32.mxu0 %vm3496_vm0, %v3495_v1 }
 0xec4   : > { %3281 = vmatprep.subr.mxu0 %v3495_v1 }
 0xf7e   : > { %v1800_v27 = vpop.f32.mrf.mxu0 }
 0xf7f   : > { %v1804_v28 = vsel %vm466_vm2, %v1800_v27, -inf }
 0xf80   : > { %1805 = vmax.xlane.f32.xlu0 %v1804_v28  ;;  %v3255_v29 = vpop.f32.mrf.mxu0 }
 0xf82   : > { %v1965_v30 = vpop.f32.mrf.mxu0 }
 0xf83   : > { %v1969_v31 = vsel %vm466_vm2, %v1965_v30, -inf }
 0xf84   : > { %1970 = vmax.xlane.f32.xlu1 %v1969_v31  ;;  %v3265_v32 = vpop.f32.mrf.mxu0 }
 0xf95   : > { %1980 = vrot.lane.b32.xlu1 %v3868_v22, %s4089_s14  ;;  %s3437_s14 = sshll.u32 %s3508_s22, 4  ;;  %s3438_s14 = int_to_ptr.vmem [resolvable:$false] %s3437_s14 }
 0xf99   : > { %2202 = vrot.lane.b32.xlu1 %v3868_v22, %s4090_s15 }
0x1009   : > { %v1806_v36 = vpop.xlane.xlu0 %1805 }
0x100a   : > { %v1807_v33 = vsub.f32 %v1800_v27, %v1806_v36 }
0x100c   : > { %v1808_v34 = vmul.f32 1.442695, %v1807_v33 }
0x100d   : > { %v1971_v37 = vpop.xlane.xlu1 %1970 }
0x100e   : > { %3413 = vpow2.f32 %v1808_v34  ;;  %v1972_v38 = vsub.f32 %v1965_v30, %v1971_v37 }
0x1010   : > { %v1973_v5 = vmul.f32 1.442695, %v1972_v38 }
0x1011   : > { %v1981_v48 = vpop.permute.xlu1 %1980 }
0x1012   : > { %3415 = vpow2.f32 %v1973_v5 }
0x101b   : > { %v3414_v39 = vpop.eup %3413 }
0x101c   : > { %v1810_v40 = vsel %vm466_vm2, %v3414_v39, 0.0 }
0x101d   : > { %1811 = vadd.xlane.f32.xlu0 %v1810_v40 }
0x101f   : > { %v3416_v41 = vpop.eup %3415 }
0x1020   : > { %v1975_v42 = vsel %vm466_vm2, %v3416_v41, 0.0 }
0x1021   : > { %1976 = vadd.xlane.f32.xlu0 %v1975_v42 }
0x1037   : > { %1815 = vrot.lane.b32.xlu0 %v3868_v22, %s4091_s13  ;;  %s3050_s13 = sshll.u32 %s3590_s21, 7  ;;  %s3439_s21 = scalar_lea.vmem %s3438_s14, 256 }
0x1038   : > { %s2918_s1 = scalar_lea.hbm %s4070_s11, %s3050_s13 }
0x103b   : > { %2204 = vrot.lane.b32.xlu0 %v3868_v22, %s4092_s16 }
0x10a6   : > { %v1812_v43 = vpop.xlane.xlu0 %1811 }
0x10a7   : > { %3417 = vrcp.f32 %v1812_v43 }
0x10aa   : > { %v1977_v44 = vpop.xlane.xlu0 %1976 }
0x10ab   : > { %3419 = vrcp.f32 %v1977_v44 }
0x10ae   : > { %v1816_v45 = vpop.permute.xlu0 %1815 }
0x10af   : > { %3257 = vmatpush3.msra.mxu1 %v1816_v45  ;;  %v3030_v45 = vld [vmem:[%s4064_s5 + $0x38] sm:$0xff] }
0x10b0   : > { %3266 = vmatprep.subr.mxu1 %v3495_v1 }
0x10b2   : > { %v2205_v3 = vpop.permute.xlu0 %2204 }
0x10b4   : > { %v3418_v46 = vpop.eup %3417 }
0x10b5   : > { %v1814_v47 = vmul.f32 %v3418_v46, %v3414_v39  ;;  %v3029_v46 = vld [vmem:[%s4064_s5 + $0x30] sm:$0xff] }
0x10b7   : > { %3259 = vmatmul.mubr.msk.f32.vlgmr.msra.gmra.mxu1 %vm466_vm2, %v1814_v47  ;;  %v3027_v47 = vld [vmem:[%s4064_s5 + $0x20] sm:$0xff] }
0x10b8   : > { %v3420_v50 = vpop.eup %3419  ;;  %3267 = vmatpush3.msra.mxu1 %v1981_v48  ;;  %3268 = vmatprep.mubr.msk.f32.mxu1 %vm3496_vm0, %v3495_v1  ;;  %v3041_v48 = vld [vmem:[%s4066_s7 + $0x78] sm:$0xff] }
0x10b9   : > { %v1979_v52 = vmul.f32 %v3420_v50, %v3416_v41  ;;  %3276 = vmatprep.subr.mxu1 %v3495_v1  ;;  %v3040_v50 = vld [vmem:[%s4066_s7 + $0x70] sm:$0xff] }
0x10bb   : > { %3269 = vmatmul.mubr.msk.f32.vlgmr.msra.gmra.mxu1 %vm466_vm2, %v1979_v52  ;;  %v3039_v52 = vld [vmem:[%s4066_s7 + $0x68] sm:$0xff] }
0x10bc   : > { %3277 = vmatpush3.msra.mxu1 %v3704_v35  ;;  %3278 = vmatprep.mubr.msk.f32.mxu1 %vm3496_vm0, %v3495_v1  ;;  %v2203_v35 = vpop.permute.xlu1 %2202 }
0x10bd   : > { %3286 = vmatprep.subr.mxu1 %v3495_v1 }
0x1177   : > { %v1887_v53 = vpop.f32.mrf.mxu1 }
0x1178   : > { %3279 = vmatmul.mubr.msk.f32.vlgmr.msra.gmra.mxu1 %vm466_vm2, %v1887_v53  ;;  %v3038_v53 = vld [vmem:[%s4066_s7 + $0x60] sm:$0xff] }
0x1179   : > { %v3260_v0 = vpop.f32.mrf.mxu1  ;;  %3288 = vmatprep.mubr.msk.f32.mxu1 %vm3496_vm0, %v3495_v1 }
0x117a   : > { %v3037_v0 = vld [vmem:[%s4066_s7 + $0x58] sm:$0xff] }
0x117b   : > { %v2052_v2 = vpop.f32.mrf.mxu1 }
0x117c   : > { %3274 = vmatmul.mubr.msk.f32.vlgmr.msra.gmra.mxu0 %vm466_vm2, %v2052_v2 }
0x117d   : > { %3282 = vmatpush3.xpose.msk.msra.mxu0 %vm466_vm2, %v2205_v3  ;;  %v3270_v4 = vpop.f32.mrf.mxu1  ;;  %3283 = vmatprep.mubr.msk.f32.mxu0 %vm3496_vm0, %v3495_v1 }
0x117e   : > { %3291 = vmatprep.subr.mxu0 %v3495_v1 }
0x1180   : > { %3284 = vmatmul.mubr.msk.f32.vlgmr.msra.gmra.mxu0 %vm466_vm2, %v2203_v35 }
0x1181   : > { %3292 = vmatpush3.msra.mxu0 %v3746_v62  ;;  %3293 = vmatprep.mubr.msk.f32.mxu0 %vm3496_vm0, %v3495_v1 }
0x1182   : > { %3301 = vmatprep.subr.mxu0 %v3495_v1 }
0x1238   : > { %v2198_v54 = vpop.f32.mrf.mxu1 }
0x123a   : > { %v3280_v55 = vpop.f32.mrf.mxu1 }
0x123c   : > { %v2125_v56 = vpop.f32.mrf.mxu0 }
0x123d   : > { %v2199_v57 = vadd.f32 %v2198_v54, %v2125_v56 }
0x123e   : > { %v3275_v58 = vpop.f32.mrf.mxu0 }
0x123f   : > { %v3035_v58 = vld [vmem:[%s4066_s7 + $0x48] sm:$0xff] }
0x1240   : > { %v2276_v59 = vpop.f32.mrf.mxu0 }
0x1241   : > { %v2280_v60 = vsel %vm466_vm2, %v2276_v59, -inf }
0x1242   : > { %2281 = vmax.xlane.f32.xlu0 %v2280_v60  ;;  %v3285_v61 = vpop.f32.mrf.mxu0 }
0x1258   : > { %2291 = vrot.lane.b32.xlu0 %v3868_v22, %s4093_s25 }
0x125c   : > { %2441 = vrot.lane.b32.xlu0 %v3868_v22, %s4094_s24 }
0x12cb   : > { %v2282_v62 = vpop.xlane.xlu0 %2281 }
0x12cc   : > { %v2283_v63 = vsub.f32 %v2276_v59, %v2282_v62 }
0x12ce   : > { %v2284_v7 = vmul.f32 1.442695, %v2283_v63  ;;  %v3043_v63 = vld [vmem:[%s4067_s8 + $0x1] ss:$0 sm:$0xff] }
0x12cf   : > { %v2292_v8 = vpop.permute.xlu0 %2291 }
0x12d0   : > { %3421 = vpow2.f32 %v2284_v7  ;;  %3287 = vmatpush3.msra.mxu1 %v2292_v8 }
0x12d1   : > { %3296 = vmatprep.subr.mxu1 %v3495_v1 }
0x12d3   : > { %v2442_v15 = vpop.permute.xlu0 %2441 }
0x12dd   : > { %v3422_v9 = vpop.eup %3421 }
0x12de   : > { %v2286_v10 = vsel %vm466_vm2, %v3422_v9, 0.0 }
0x12df   : > { %2287 = vadd.xlane.f32.xlu1 %v2286_v10 }
0x12f0   : > { %2443 = vrot.lane.b32.xlu1 %v3868_v22, %s4095_s29  ;;  %s375_s29 = sand.u32 1, %s3485_s18  }
0x12f1   : > { %s2907_s2 = scalar_lea.sflag [#allocation3], %s375_s29 }
0x1368   : > { %v2288_v11 = vpop.xlane.xlu1 %2287 }
0x1369   : > { %3423 = vrcp.f32 %v2288_v11 }
0x136c   : > { %v2444_v14 = vpop.permute.xlu1 %2443 }
0x1376   : > { %v3424_v12 = vpop.eup %3423 }
0x1377   : > { %v2290_v13 = vmul.f32 %v3424_v12, %v3422_v9 }
0x1379   : > { %3289 = vmatmul.mubr.msk.f32.vlgmr.msra.gmra.mxu1 %vm466_vm2, %v2290_v13 }
0x137a   : > { %3297 = vmatpush3.xpose.msk.msra.mxu1 %vm466_vm2, %v2444_v14  ;;  %3298 = vmatprep.mubr.msk.f32.mxu1 %vm3496_vm0, %v3495_v1 }
0x137b   : > { %3306 = vmatprep.subr.mxu1 %v3495_v1 }
0x137d   : > { %3299 = vmatmul.mubr.msk.f32.vlgmr.msra.gmra.mxu1 %vm466_vm2, %v2442_v15 }
0x137e   : > { %3307 = vmatpush3.msra.mxu1 %v3761_v17  ;;  %3308 = vmatprep.mubr.msk.f32.mxu1 %vm3496_vm0, %v3495_v1 }
0x137f   : > { %3322 = vmatprep.subr.mxu1 %v3495_v1 }
0x1439   : > { %v2363_v16 = vpop.f32.mrf.mxu1 }
0x143a   : > { %3294 = vmatmul.mubr.msk.f32.vlgmr.msra.gmra.mxu0 %vm466_vm2, %v2363_v16 }
0x143b   : > { %v3290_v6 = vpop.f32.mrf.mxu1  ;;  %3303 = vmatprep.mubr.msk.f32.mxu0 %vm3496_vm0, %v3495_v1 }
0x143d   : > { %v2515_v18 = vpop.f32.mrf.mxu1 }
0x143e   : > { %v2519_v19 = vsel %vm466_vm2, %v2515_v18, -inf }
0x143f   : > { %2520 = vmax.xlane.f32.xlu1 %v2519_v19  ;;  %v3300_v20 = vpop.f32.mrf.mxu1 }
0x1440   : > { %v3047_v20 = vld [vmem:[%s4068_s9 + $0x1] ss:$0 sm:$0xff] }
0x14c8   : > { %v2521_v23 = vpop.xlane.xlu1 %2520 }
0x14c9   : > { %v2522_v24 = vsub.f32 %v2515_v18, %v2521_v23 }
0x14cb   : > { %v2523_v17 = vmul.f32 1.442695, %v2522_v24  ;;  %v3048_v24 = vld [vmem:[%s4069_s10 + $0x1] ss:$0 sm:$0xff] }
0x14cd   : > { %3425 = vpow2.f32 %v2523_v17 }
0x14da   : > { %v3426_v25 = vpop.eup %3425 }
0x14db   : > { %v2525_v26 = vsel %vm466_vm2, %v3426_v25, 0.0 }
0x14dc   : > { %2526 = vadd.xlane.f32.xlu0 %v2525_v26 }
0x14f2   : > { %2530 = vrot.lane.b32.xlu0 %v3868_v22, %s4096_s30  ;;  %s2983_s30 = sshll.u32 %s375_s29, 3 }
0x14f3   : > { %s377_s16 = scalar_lea.vmem [#allocation2], %s2983_s30 }
0x14f4   : > { %s2920_s25 = sshll.u32 %s377_s16, 4  ;;  %s2921_s25 = int_to_ptr.vmem [resolvable:$true] %s2920_s25 }
0x14f5   : > { %s3433_s12 = scalar_lea.vmem %s2921_s25, 128  ;;  %p3440_p0 = scmp.lt.s32.totalorder %s2921_s25, %s3438_s14 }
0x14f6   : > { %p3434_p11 = scmp.ne.s32.totalorder %s2921_s25, %s3433_s12  ;;  %p3441_p1 = scmp.lt.s32.totalorder %s3439_s21, %s3433_s12 }
0x14f8   : > { %p3435_p12 = pnand %p3434_p11, %p3607_p5  ;;  %p3442_p2 = por %p3441_p1, %p3440_p0 }
0x14fa   : > { %v2436_v27 = vpop.f32.mrf.mxu0  ;;  %p3436_p13 = pneg %p3435_p12 }
0x14fb   : > { %v2440_v28 = vadd.f32 %v2436_v27, %v2199_v57  ;;  %v3036_v57 = vld [vmem:[%s4066_s7 + $0x50] sm:$0xff] }
0x14fc   : > { %v3295_v29 = vpop.f32.mrf.mxu0  ;;  %p3443_p3 = pnand %p3442_p2, %p3436_p13 }
0x1565   : > { %v2527_v30 = vpop.xlane.xlu0 %2526 }
0x1566   : > { %3427 = vrcp.f32 %v2527_v30 }
0x1569   : > { %v2531_v31 = vpop.permute.xlu0 %2530 }
0x156a   : > { %3302 = vmatpush3.msra.mxu0 %v2531_v31 }
0x156b   : > { %3311 = vmatprep.subr.mxu0 %v3495_v1 }
0x1573   : > { %v3428_v32 = vpop.eup %3427 }
0x1574   : > { %v2529_v36 = vmul.f32 %v3428_v32, %v3426_v25 }
0x1576   : > { %3304 = vmatmul.mubr.msk.f32.vlgmr.msra.gmra.mxu0 %vm466_vm2, %v2529_v36 }
0x1577   : > { %3319 = vmatprep.mubr.msk.f32.mxu0 %vm3496_vm0, %v3495_v1  ;;  %3312 = vmatpush3.msra.mxu0 %v3030_v45 }
0x1578   : > { %3313 = vmatprep.subr.mxu0 %v3495_v1 }
0x1579   : > { %3314 = vmatpush3.msra.mxu0 %v3029_v46 }
0x157a   : > { %3315 = vmatprep.subr.mxu0 %v3495_v1 }
0x1636   : > { %v2602_v33 = vpop.f32.mrf.mxu0 }
0x1637   : > { %3309 = vmatmul.mubr.msk.f32.vlgmr.msra.gmra.mxu1 %vm466_vm2, %v2602_v33 }
0x1638   : > { %v3305_v22 = vpop.f32.mrf.mxu0  ;;  %3338 = vmatprep.mubr.msk.f32.mxu1 %vm3496_vm0, %v3495_v1  ;;  %3323 = vmatpush3.msra.mxu1 %v3041_v48 }
0x1639   : > { %3324 = vmatprep.subr.mxu1 %v3495_v1 }
0x163a   : > { %3325 = vmatpush3.msra.mxu1 %v3040_v50 }
0x163b   : > { %3326 = vmatprep.subr.mxu1 %v3495_v1 }
0x163c   : > { %3327 = vmatpush3.msra.mxu1 %v3039_v52 }
0x163d   : > { %3328 = vmatprep.subr.mxu1 %v3495_v1 }
0x163e   : > { %3329 = vmatpush3.msra.mxu1 %v3038_v53 }
0x163f   : > { %3330 = vmatprep.subr.mxu1 %v3495_v1 }
0x1640   : > { %3331 = vmatpush3.msra.mxu1 %v3037_v0 }
0x1641   : > { %3332 = vmatprep.subr.mxu1 %v3495_v1 }
0x1642   : > { %3333 = vmatpush3.msra.mxu1 %v3036_v57 }
0x1643   : > { %3334 = vmatprep.subr.mxu1 %v3495_v1 }
0x1644   : > { %3335 = vmatpush3.msra.mxu1 %v3035_v58 }
0x1645   : > { %3336 = vmatprep.subr.mxu1 %v3495_v1 }
0x16f7   : > { %v2675_v34 = vpop.f32.mrf.mxu1 }
0x16f8   : > { %v2679_v37 = vadd.f32 %v2675_v34, %v2440_v28 }
0x16f9   : > { %v3310_v38 = vpop.f32.mrf.mxu1 }
0x16fa   : > { %v2680_v5 = vadd.f32 %v2679_v37, %v3862_v21  ;;  %v3028_v21 = vld [vmem:[%s4064_s5 + $0x28] sm:$0xff] }
0x16fb   : > { %3316 = vmatpush3.msra.mxu0 %v3028_v21 }
0x16fc   : > { %v2681_v39 = vsel %vm389_vm1, %v2680_v5, 0.0  ;;  %3317 = vmatprep.subr.mxu0 %v3495_v1 }
0x16fd   : > { %2682 = vadd.xlane.f32.xlu1 %v2681_v39  ;;  %3318 = vmatpush3.msra.mxu0 %v3027_v47 }
0x1786   : > { %v2683_v40 = vpop.xlane.xlu1 %2682 }
0x1787   : > { %v2684_v41 = vmul.f32 0.03125, %v2683_v40 }
0x1789   : > { %v2685_v42 = vsub.f32 %v2680_v5, %v2684_v41 }
0x178b   : > { %v2686_v43 = vmul.f32 %v2685_v42, %v2685_v42 }
0x178d   : > { %v2687_v44 = vsel %vm389_vm1, %v2686_v43, 0.0 }
0x178e   : > { %2688 = vadd.xlane.f32.xlu1 %v2687_v44 }
0x1817   : > { %v2689_v2 = vpop.xlane.xlu1 %2688 }
0x1818   : > { %v2690_v3 = vmul.f32 0.03125, %v2689_v2 }
0x181a   : > { %v2691_v4 = vadd.f32 1e-06, %v2690_v3 }
0x181c   : > { %3429 = vrsqrt.f32 %v2691_v4 }
0x1829   : > { %v3430_v35 = vpop.eup %3429 }
0x182a   : > { %v2693_v54 = vmul.f32 %v3430_v35, %v2685_v42 }
0x182c   : > { %v2694_v55 = vmul.f32 %v3813_v49, %v2693_v54  ;;  %v3034_v49 = vld [vmem:[%s4066_s7 + $0x40] sm:$0xff] }
0x182d   : > { %3337 = vmatpush3.msra.mxu1 %v3034_v49 }
0x182e   : > { %v2695_v56 = vadd.f32 %v3818_v51, %v2694_v55  ;;  %v3032_v51 = vld [vmem:[%s4065_s6 + $0x1] ss:$0 sm:$0xff] }
0x1830   : > { %3320 = vmatmul.mubr.msk.f32.vlgmr.msra.gmra.mxu0 %vm389_vm1, %v2695_v56 }
0x18f0   : > { %v2778_v59 = vpop.f32.mrf.mxu0 }
0x18f1   : > { %v2779_v60 = vadd.f32 %v3032_v51, %v2778_v59 }
0x18f2   : > { %v3321_v61 = vpop.f32.mrf.mxu0 }
0x18f3   : > { %v2782_v62 = vmax.f32 %v2779_v60, 0.0 }
0x18f5   : > { %3339 = vmatmul.mubr.msk.f32.vlgmr.msra.gmra.mxu1 %vm1550_vm3, %v2782_v62 }
0x19b5   : > { %v2869_v7 = vpop.f32.mrf.mxu1 }
0x19b6   : > { %v2870_v8 = vadd.f32 %v3043_v63, %v2869_v7 }
0x19b7   : > { %v3340_v9 = vpop.f32.mrf.mxu1 }
0x19b8   : > { %v2873_v1 = vadd.f32 %v2870_v8, %v2695_v56 }
0x19ba   : > { %v2878_v10 = vsel %vm389_vm1, %v2873_v1, 0.0 }
0x19bb   : > { %2879 = vadd.xlane.f32.xlu1 %v2878_v10 }
0x1a44   : > { %v2880_v11 = vpop.xlane.xlu1 %2879 }
0x1a45   : > { %v2881_v12 = vmul.f32 0.03125, %v2880_v11 }
0x1a47   : > { %v2882_v13 = vsub.f32 %v2873_v1, %v2881_v12 }
0x1a49   : > { %v2883_v14 = vmul.f32 %v2882_v13, %v2882_v13 }
0x1a4b   : > { %v2884_v15 = vsel %vm389_vm1, %v2883_v14, 0.0 }
0x1a4c   : > { %2885 = vadd.xlane.f32.xlu1 %v2884_v15 }
0x1ad5   : > { %v2886_v16 = vpop.xlane.xlu1 %2885 }
0x1ad6   : > { %v2887_v6 = vmul.f32 0.03125, %v2886_v16 }
0x1ad8   : > { %v2888_v18 = vadd.f32 1e-06, %v2887_v6 }
0x1ada   : > { %3431 = vrsqrt.f32 %v2888_v18 }
0x1ae7   : > { %v3432_v19 = vpop.eup %3431 }
0x1ae8   : > { %v2890_v23 = vmul.f32 %v3432_v19, %v2882_v13 }
0x1aea   : > { %v2897_v17 = vmul.f32 %v3047_v20, %v2890_v23 }
0x1aec   : > { %v2904_v25 = vadd.f32 %v3048_v24, %v2897_v17 }
0x1aee   : > { %2905 = vst.msk [vmem:[%s377_s16] sm:$0xff] %vm389_vm1, %v2904_v25 }
0x1aef   : > { %3446 = shalt.err (!%p3443_p3)
}
0x1af0   : > { %s3447_s0 = scalar_lea.hbm %s2918_s1, 128  ;;  %s3451_s15 = scalar_lea.hbm %s4070_s11, 256 }
0x1af1   : > { %p3448_p4 = scmp.ne.s32.totalorder %s2918_s1, %s3447_s0  ;;  %p3452_p9 = scmp.lt.s32.totalorder %s2918_s1, %s4070_s11 }
0x1af2   : > { %p3453_p10 = scmp.lt.s32.totalorder %s3451_s15, %s3447_s0 }
0x1af3   : > { %p3449_p7 = pnand %p3448_p4, %p3607_p5 }
0x1af4   : > { %p3454_p11 = por %p3453_p10, %p3452_p9 }
0x1af5   : > { %p3450_p8 = pneg %p3449_p7 }
0x1af7   : > { %p3455_p12 = pnand %p3454_p11, %p3450_p8 }
0x1af9   : > { %3458 = shalt.err (!%p3455_p12)
}
0x1afa   : > { %3341 = dma.vmem_to_hbm [thread:$0]  (%p3607_p5), %s2921_s25, 128, %s2918_s1, %s2907_s2  }
0x1afb PF: > { %p3347_p13 = scmp.ge.s32.totalorder %s3493_s20, 2  ;;  %s2932_s24 = sand.u32 1, %s3481_s17  }
0x1afc   : > { %s2933_s12 = scalar_lea.sflag [#allocation3], %s2932_s24 }
0x1afd   : > { %p3344_p0 = pnand %p3347_p13, %p3611_p6 }
0x1aff   : > { %p3345_p1 = pneg %p3344_p0 }
0x1b01   : > { %3476 = dma.done.wait (%p3345_p1), %s2933_s12, 128  }
0x1b02   : > { %3478 = vsyncadd (%p3345_p1), %s2933_s12, 4294967168  ;;  %p21_p2 = scmp.ge.s32.totalorder %s3594_s23, 4   ;;  %s4097_s17 = smov %s3485_s18 }
0x1b03   : > { %s4098_s18 = smov %s3489_s19  ;;  %s4099_s19 = smov %s3605_s26 }
0x1b04   : > { %s4100_s20 = smov %s3594_s23  ;;  %23 = sbr.rel (!%p21_p2) target bundleno = 7 (0x7), region = 105 }
0x1b09   :  { %2938 = vsyncpa [#allocation3], 1 }
0x1b0a   :  { %2940 = vsyncpa [#allocation3 + $0x1], 1 }

</bundles_post_ra>
